<compile_context>
chip_gen: v6e
topology: v6e:2x2x1
jax: 0.10.0
libtpu: 0.0.40
codegen_flags: <defaults>
</compile_context>

<pallas_src>
import math

import jax
import jax.numpy as jnp
from jax import lax
from jax.experimental import pallas as pl
from jax.experimental.pallas import tpu as pltpu


def _round_up(a, b):
    return -(-a // b) * b


def _tpu_tuning():
    """Per-generation tuning: (ncores, logits-tile byte target, scoped-VMEM cap)."""
    kind = ""
    try:
        kind = (jax.devices()[0].device_kind or "").lower()
    except Exception:
        pass
    is_v7 = ("v7" in kind) or ("7x" in kind)
    is_lite = ("lite" in kind) or ("v5e" in kind) or ("v6" in kind)
    megacore = is_v7 or (("v4" in kind or "v5" in kind) and not is_lite)
    if is_v7:
        # v7x: 64 MiB physical VMEM, 2 TensorCores, compute-bound -> modest tiles.
        return 2, 6 * 2**20, 48 * 2**20
    # v5e / v6e: 128 MiB physical VMEM, 1 TensorCore, HBM/VALU-bound -> bigger tiles.
    return (2 if megacore else 1), 8 * 2**20, 96 * 2**20


def _make_kernel(*, L, C, TPB, LANE, P, tiles_per_core, drows, has_pad, pr):
    f32 = jnp.float32

    def kernel(x_ref, t_ref, m_ref, sums_ref, dice_ref):
        # x_ref    : (L, C, TPB, LANE)   logits tile (f32 or bf16, upcast in-kernel)
        # t_ref    : (L, TPB, LANE)      integer targets tile (int8 / int32)
        # m_ref    : (C, C) f32          penalty matrix (SMEM scalar reads)
        # sums_ref : (8, LANE) f32       rows: 0 CE sum, 1 z = sum(exp x), 2 penalty numerator
        # dice_ref : (drows, LANE) f32   rows [0,LC) inter, [LC,2LC) ground, [2LC,3LC) pred

        @pl.when(pl.program_id(1) == 0)               # this core's first pixel tile
        def _init():
            sums_ref[...] = jnp.zeros_like(sums_ref)
            dice_ref[...] = jnp.zeros_like(dice_ref)

        # validity mask for padded pixels (hoisted; compiled out when there is no padding)
        if has_pad:
            tile = pl.program_id(0) * tiles_per_core + pl.program_id(1)
            pix = (tile * (TPB * LANE)
                   + lax.broadcasted_iota(jnp.int32, (TPB, LANE), 0) * LANE
                   + lax.broadcasted_iota(jnp.int32, (TPB, LANE), 1))
            validf = (pix < P).astype(f32)
        else:
            validf = None

        ce_tile = jnp.zeros((TPB, LANE), f32)         # sum_l (logsumexp - x_true)
        z_tile = jnp.zeros((TPB, LANE), f32)          # sum_{l,c} exp(x)
        inter_rows, ground_rows, pred_rows = [], [], []

        for l in range(L):                            # L is tiny (batch * num_samples)
            t_l = t_ref[l]
            if t_l.dtype != jnp.int32:
                t_l = t_l.astype(jnp.int32)

            # pass 1: class-axis max (first of exactly two VMEM reads of each x slab)
            xmax = x_ref[l, 0]
            for c in range(1, C):
                xmax = jnp.maximum(xmax, x_ref[l, c])
            xmax = xmax.astype(f32)

            # pass 2 (fused): second x read; cached shifted exp, x_true, dice 'ground'
            es = []
            sumexp = None
            x_true = jnp.zeros((TPB, LANE), f32)
            for c in range(C):
                x_lc = x_ref[l, c].astype(f32)
                m_c = t_l == c
                e_c = jnp.exp(x_lc - xmax)
                es.append(e_c)
                sumexp = e_c if sumexp is None else sumexp + e_c
                x_true = jnp.where(m_c, x_lc, x_true)
                g = jnp.where(m_c, validf, 0.0) if has_pad else m_c.astype(f32)
                ground_rows.append(jnp.sum(g, axis=0, keepdims=True))

            # EUP work: one approx reciprocal (+ 1 Newton step) and one log per element
            inv = pl.reciprocal(sumexp, approx=True)
            inv = inv * (2.0 - sumexp * inv)
            lse = jnp.log(sumexp) + xmax
            ce_tile = ce_tile + (lse - x_true)
            z_tile = z_tile + sumexp * jnp.exp(xmax)  # unshifted sum(exp x), torch semantics

            # pass 3: probabilities + dice partials from the cached exp slabs (no x reload)
            inv_v = inv * validf if has_pad else inv
            for c in range(C):
                probm = es[c] * inv_v
                inter_rows.append(jnp.sum(jnp.where(t_l == c, probm, 0.0),
                                          axis=0, keepdims=True))
                pred_rows.append(jnp.sum(probm, axis=0, keepdims=True))

        # penalty numerator: the torch double loop only touches pixel columns j < L,
        # which all live in the first `pr` pixel rows of the very first tile.
        first_tile = jnp.logical_and(pl.program_id(0) == 0, pl.program_id(1) == 0)

        @pl.when(first_tile)
        def _penalty():
            row = lax.broadcasted_iota(jnp.int32, (pr, LANE), 0)
            lane = lax.broadcasted_iota(jnp.int32, (pr, LANE), 1)
            jmaskf = ((row * LANE + lane) < L).astype(f32)
            pen = jnp.zeros((pr, LANE), f32)
            for l in range(L):
                t_row = t_ref[l, pl.ds(0, pr), :]
                if t_row.dtype != jnp.int32:
                    t_row = t_row.astype(jnp.int32)
                for cp in range(C):                   # logit class (column of M)
                    w = jnp.zeros((pr, LANE), f32)
                    for ct in range(C):               # target class (row of M)
                        w = w + m_ref[ct, cp] * (t_row == ct).astype(f32)
                    x_row = x_ref[l, cp, pl.ds(0, pr), :].astype(f32)
                    pen = pen + w * jnp.exp(x_row)    # unshifted exp, as in the reference
            sums_ref[pl.ds(2, 1), :] = (
                sums_ref[pl.ds(2, 1), :] + jnp.sum(pen * jmaskf, axis=0, keepdims=True))

        # batched accumulator updates: one dense store for sums, one for all dice rows
        if has_pad:
            ce_row = jnp.sum(ce_tile * validf, axis=0, keepdims=True)
            z_row = jnp.sum(z_tile * validf, axis=0, keepdims=True)
        else:
            ce_row = jnp.sum(ce_tile, axis=0, keepdims=True)
            z_row = jnp.sum(z_tile, axis=0, keepdims=True)
        sums_ref[...] = sums_ref[...] + jnp.concatenate(
            [ce_row, z_row, jnp.zeros((6, LANE), f32)], axis=0)

        dice_rows = inter_rows + ground_rows + pred_rows
        if drows > 3 * L * C:
            dice_rows.append(jnp.zeros((drows - 3 * L * C, LANE), f32))
        dice_ref[...] = dice_ref[...] + jnp.concatenate(dice_rows, axis=0)

    return kernel


def criterion_loss(outputs, targets, matrix_penalty, *, beta=1.0,
                   tile_bytes=None, ncores=None, vmem_cap=None):
    """outputs: (B, C, D, H, W) float logits (f32 or bf16, PyTorch NCDHW);
       targets: (B, 1, D, H, W) integer labels (int8 OK when C < 128);
       matrix_penalty: (C, C)."""
    L, C = int(outputs.shape[0]), int(outputs.shape[1])
    P = math.prod(int(s) for s in outputs.shape[2:])
    assert int(targets.shape[0]) == L and math.prod(int(s) for s in targets.shape[1:]) == P
    assert L <= P, "penalty quirk (j < length_targets) assumes Npixels >= length_targets"

    auto_cores, auto_tile, auto_cap = _tpu_tuning()
    ncores = auto_cores if ncores is None else int(ncores)
    tile_bytes = auto_tile if tile_bytes is None else int(tile_bytes)
    vmem_cap = auto_cap if vmem_cap is None else int(vmem_cap)

    # keep bf16 logits / narrow integer targets in HBM; upcast per tile inside the kernel
    x = outputs.reshape(L, C, P)
    if x.dtype not in (jnp.float32, jnp.bfloat16):
        x = x.astype(jnp.float32)
    t = targets.reshape(L, P)
    if (not jnp.issubdtype(t.dtype, jnp.integer)) or t.dtype.itemsize > 4:
        t = t.astype(jnp.int32)
    if t.dtype.itemsize == 1:
        assert C <= 127, "int8 targets require N_classes < 128"
    M = matrix_penalty.astype(jnp.float32)

    LANE = 128
    G = 32                       # sublane granularity valid for f32 / bf16 / int8 tiles
    PB = -(-P // LANE)
    LC = L * C
    DROWS = _round_up(3 * LC, 8)
    x_isz, t_isz = x.dtype.itemsize, t.dtype.itemsize

    def vmem_need(tpb):          # double-buffered inputs + element temporaries + accumulators
        tile_x = L * C * tpb * LANE * x_isz
        tile_t = L * tpb * LANE * t_isz
        temps = (C + 8) * tpb * LANE * 4
        accs = 2 * (8 + DROWS) * LANE * 4
        return 2 * (tile_x + tile_t) + temps + accs + (4 << 20)

    row_bytes = L * C * LANE * x_isz
    rows = max(G, (tile_bytes // row_bytes) // G * G)
    while rows > G and vmem_need(rows) > int(0.6 * vmem_cap):
        rows = max(G, (rows // 2) // G * G)

    if ncores == 1 and PB <= rows:
        TPB, num_tiles = PB, 1                        # single full-extent block (layout-exempt)
    else:
        TPB = min(rows, _round_up(PB, G))
        num_tiles = _round_up(-(-PB // TPB), ncores)  # even split across TensorCores
        TPB = _round_up(-(-PB // num_tiles), G)       # rebalance tiles -> minimal padding
    PB_pad = num_tiles * TPB
    tiles_per_core = num_tiles // ncores
    has_pad = (PB_pad * LANE != P)
    assert L <= TPB * LANE, "all penalty pixels (j < length_targets) must fit the first tile"
    PR = -(-L // LANE)                                # pixel rows holding the j < L columns

    if has_pad:                                       # pad pixel axis; masked inside the kernel
        x = jnp.pad(x, ((0, 0), (0, 0), (0, PB_pad * LANE - P)))
        t = jnp.pad(t, ((0, 0), (0, PB_pad * LANE - P)))
    x = x.reshape(L, C, PB_pad, LANE)
    t = t.reshape(L, PB_pad, LANE)

    kernel = _make_kernel(L=L, C=C, TPB=TPB, LANE=LANE, P=P,
                          tiles_per_core=tiles_per_core, drows=DROWS,
                          has_pad=has_pad, pr=PR)

    vmem_limit = int(min(vmem_cap, max(2 * vmem_need(TPB), 32 << 20)))

    sums_out, dice_out = pl.pallas_call(
        kernel,
        out_shape=(
            jax.ShapeDtypeStruct((ncores * 8, LANE), jnp.float32),
            jax.ShapeDtypeStruct((ncores * DROWS, LANE), jnp.float32),
        ),
        grid_spec=pltpu.PrefetchScalarGridSpec(
            num_scalar_prefetch=0,
            grid=(ncores, tiles_per_core),
            in_specs=[
                pl.BlockSpec((L, C, TPB, LANE),
                             lambda h, p: (0, 0, h * tiles_per_core + p, 0)),
                pl.BlockSpec((L, TPB, LANE),
                             lambda h, p: (0, h * tiles_per_core + p, 0)),
                pl.BlockSpec(memory_space=pltpu.MemorySpace.SMEM),
            ],
            out_specs=[
                pl.BlockSpec((8, LANE), lambda h, p: (h, 0)),
                pl.BlockSpec((DROWS, LANE), lambda h, p: (h, 0)),
            ]),
        compiler_params=pltpu.CompilerParams(
            dimension_semantics=("parallel", "arbitrary"),
            vmem_limit_bytes=vmem_limit),
    )(x, t, M)

    # tiny epilogue in plain JAX: combine per-core lane-partial sums
    sums = sums_out.reshape(ncores, 8, LANE)
    ce_sum = jnp.sum(sums[:, 0, :])
    z = jnp.sum(sums[:, 1, :])
    pen = jnp.sum(sums[:, 2, :])

    d = dice_out.reshape(ncores, DROWS, LANE).sum(axis=(0, 2))
    inter, ground, pred = d[:LC], d[LC:2 * LC], d[2 * LC:3 * LC]
    smooth = 1e-5
    dice = jnp.mean(1.0 - (2.0 * inter + smooth) / (ground + pred + smooth))
    ce = ce_sum / float(L * P)
    return ce + dice + beta * pen / (z * float(L * P))


def reference_loss(outputs, targets, M):
    """Pure-JAX reference of the same math (validation only)."""
    B, C = outputs.shape[0], outputs.shape[1]
    P = math.prod(int(s) for s in outputs.shape[2:])
    x = outputs.reshape(B, C, P).astype(jnp.float32)          # (L, C, P)
    t = targets.reshape(B, P).astype(jnp.int32)               # (L, P)
    onehot = jax.nn.one_hot(t, C, axis=1)                     # (L, C, P)
    # cross entropy
    logp = jax.nn.log_softmax(x, axis=1)
    ce = -jnp.mean(jnp.sum(onehot * logp, axis=1))
    # dice
    probs = jax.nn.softmax(x, axis=1)
    inter = jnp.sum(onehot * probs, axis=2)
    ground = jnp.sum(onehot, axis=2)
    pred = jnp.sum(probs, axis=2)
    s = 1e-5
    dice = jnp.mean(1.0 - (2.0 * inter + s) / (ground + pred + s))
    # penalty (unshifted exp, j < L quirk)
    z = jnp.sum(jnp.exp(x))
    mrows = M[t]                                              # (L, P, C)
    pen = jnp.einsum('lpc,lcp->lp', mrows, jnp.exp(x))
    pen = jnp.sum(pen[:, :B]) / z
    return ce + dice + 1.0 * (pen / float(B * P))


if __name__ == "__main__":
    key = jax.random.PRNGKey(0)
    k1, k2 = jax.random.split(key)

    # small shapes consistent with the module: spatial_size=4 -> Npixels=64,
    # length_targets = batch_size_train * num_samples = 2, N_classes = 4
    B, C, S = 2, 4, 4
    outputs = jax.random.normal(k1, (B, C, S, S, S), dtype=jnp.float32) * 0.5
    targets = jax.random.randint(k2, (B, 1, S, S, S), 0, C, dtype=jnp.int32).astype(jnp.int8)

    # deterministic penalty matrix: normalized class-distance penalty
    idx = jnp.arange(C, dtype=jnp.float32)
    matrix_penalty = jnp.abs(idx[:, None] - idx[None, :]) / float(C - 1)

    loss = criterion_loss(outputs, targets, matrix_penalty)
    loss = jax.block_until_ready(loss)

    ref = reference_loss(outputs, targets, matrix_penalty)
    assert bool(jnp.isfinite(loss))
    assert jnp.allclose(loss, ref, rtol=1e-4, atol=1e-4), (float(loss), float(ref))
    print("KERNEL_OK")
</pallas_src>

<mosaic_0001>
module attributes {stable_mosaic.version = 11 : i64} {
  func.func @kernel(%arg0: i32, %arg1: i32, %arg2: memref<2x4x1x128xf32, #tpu.memory_space<vmem>>, %arg3: memref<2x1x128xi8, #tpu.memory_space<vmem>>, %arg4: memref<4x4xf32, #tpu.memory_space<smem>>, %arg5: memref<8x128xf32, #tpu.memory_space<vmem>>, %arg6: memref<24x128xf32, #tpu.memory_space<vmem>>) attributes {dimension_semantics = [#tpu.dimension_semantics<parallel>, #tpu.dimension_semantics<arbitrary>], iteration_bounds = array<i64: 1, 1>, scalar_prefetch = 0 : i64, scratch_operands = 0 : i64, tpu.core_type = #tpu.core_type<tc>, window_params = [{transform_indices = @transform_0, window_bounds = array<i64: 2, 4, 1, 128>}, {transform_indices = @transform_1, window_bounds = array<i64: 2, 1, 128>}, {transform_indices = @transform_2, window_bounds = array<i64: 4, 4>}, {transform_indices = @transform_3, window_bounds = array<i64: 8, 128>}, {transform_indices = @transform_4, window_bounds = array<i64: 24, 128>}]} {
    %c0_i32 = arith.constant 0 : i32
    %0 = arith.cmpi eq, %arg1, %c0_i32 : i32
    %1 = arith.extui %0 : i1 to i32
    %c0_i32_0 = arith.constant 0 : i32
    %2 = arith.cmpi ne, %1, %c0_i32_0 : i32
    scf.if %2 {
      %cst_141 = arith.constant 0.000000e+00 : f32
      %263 = vector.broadcast %cst_141 : f32 to vector<8x128xf32>
      %c0_142 = arith.constant 0 : index
      %c0_143 = arith.constant 0 : index
      %264 = vector.load %arg5[%c0_142, %c0_143] : memref<8x128xf32, #tpu.memory_space<vmem>>, vector<8x128xf32>
      tpu.vector_store %arg5[%c0_142, %c0_143], %263 {strides = array<i32>} : memref<8x128xf32, #tpu.memory_space<vmem>>, vector<8x128xf32>,
      %cst_144 = arith.constant 0.000000e+00 : f32
      %265 = vector.broadcast %cst_144 : f32 to vector<24x128xf32>
      %c0_145 = arith.constant 0 : index
      %c0_146 = arith.constant 0 : index
      %266 = vector.load %arg6[%c0_145, %c0_146] : memref<24x128xf32, #tpu.memory_space<vmem>>, vector<24x128xf32>
      tpu.vector_store %arg6[%c0_145, %c0_146], %265 {strides = array<i32>} : memref<24x128xf32, #tpu.memory_space<vmem>>, vector<24x128xf32>,
    } else {
    }
    %c1_i32 = arith.constant 1 : i32
    %3 = arith.muli %arg0, %c1_i32 : i32
    %4 = arith.addi %3, %arg1 : i32
    %c128_i32 = arith.constant 128 : i32
    %5 = arith.muli %4, %c128_i32 : i32
    %6 = tpu.iota {dimensions = array<i32: 0>} : vector<1x128xi32>
    %c128_i32_1 = arith.constant 128 : i32
    %7 = vector.broadcast %c128_i32_1 : i32 to vector<1x128xi32>
    %8 = arith.muli %6, %7 : vector<1x128xi32>
    %9 = vector.broadcast %5 : i32 to vector<1x128xi32>
    %10 = arith.addi %9, %8 : vector<1x128xi32>
    %11 = tpu.iota {dimensions = array<i32: 1>} : vector<1x128xi32>
    %12 = arith.addi %10, %11 : vector<1x128xi32>
    %c64_i32 = arith.constant 64 : i32
    %13 = vector.broadcast %c64_i32 : i32 to vector<1x128xi32>
    %14 = arith.cmpi slt, %12, %13 : vector<1x128xi32>
    %15 = arith.extui %14 : vector<1x128xi1> to vector<1x128xi32>
    %16 = arith.sitofp %15 : vector<1x128xi32> to vector<1x128xf32>
    %cst = arith.constant 0.000000e+00 : f32
    %17 = vector.broadcast %cst : f32 to vector<1x128xf32>
    %cst_2 = arith.constant 0.000000e+00 : f32
    %18 = vector.broadcast %cst_2 : f32 to vector<1x128xf32>
    %c0 = arith.constant 0 : index
    %c0_3 = arith.constant 0 : index
    %c0_4 = arith.constant 0 : index
    %19 = vector.load %arg3[%c0, %c0_3, %c0_4] : memref<2x1x128xi8, #tpu.memory_space<vmem>>, vector<1x1x128xi8>
    %20 = vector.shape_cast %19 : vector<1x1x128xi8> to vector<1x128xi8>
    %21 = arith.extsi %20 : vector<1x128xi8> to vector<1x128xi32>
    %c0_5 = arith.constant 0 : index
    %c0_6 = arith.constant 0 : index
    %c0_7 = arith.constant 0 : index
    %c0_8 = arith.constant 0 : index
    %22 = vector.load %arg2[%c0_5, %c0_6, %c0_7, %c0_8] : memref<2x4x1x128xf32, #tpu.memory_space<vmem>>, vector<1x1x1x128xf32>
    %23 = vector.shape_cast %22 : vector<1x1x1x128xf32> to vector<1x128xf32>
    %c0_9 = arith.constant 0 : index
    %c1 = arith.constant 1 : index
    %c0_10 = arith.constant 0 : index
    %c0_11 = arith.constant 0 : index
    %24 = vector.load %arg2[%c0_9, %c1, %c0_10, %c0_11] : memref<2x4x1x128xf32, #tpu.memory_space<vmem>>, vector<1x1x1x128xf32>
    %25 = vector.shape_cast %24 : vector<1x1x1x128xf32> to vector<1x128xf32>
    %26 = arith.maximumf %23, %25 : vector<1x128xf32>
    %c0_12 = arith.constant 0 : index
    %c2 = arith.constant 2 : index
    %c0_13 = arith.constant 0 : index
    %c0_14 = arith.constant 0 : index
    %27 = vector.load %arg2[%c0_12, %c2, %c0_13, %c0_14] : memref<2x4x1x128xf32, #tpu.memory_space<vmem>>, vector<1x1x1x128xf32>
    %28 = vector.shape_cast %27 : vector<1x1x1x128xf32> to vector<1x128xf32>
    %29 = arith.maximumf %26, %28 : vector<1x128xf32>
    %c0_15 = arith.constant 0 : index
    %c3 = arith.constant 3 : index
    %c0_16 = arith.constant 0 : index
    %c0_17 = arith.constant 0 : index
    %30 = vector.load %arg2[%c0_15, %c3, %c0_16, %c0_17] : memref<2x4x1x128xf32, #tpu.memory_space<vmem>>, vector<1x1x1x128xf32>
    %31 = vector.shape_cast %30 : vector<1x1x1x128xf32> to vector<1x128xf32>
    %32 = arith.maximumf %29, %31 : vector<1x128xf32>
    %cst_18 = arith.constant 0.000000e+00 : f32
    %33 = vector.broadcast %cst_18 : f32 to vector<1x128xf32>
    %c0_19 = arith.constant 0 : index
    %c0_20 = arith.constant 0 : index
    %c0_21 = arith.constant 0 : index
    %c0_22 = arith.constant 0 : index
    %34 = vector.load %arg2[%c0_19, %c0_20, %c0_21, %c0_22] : memref<2x4x1x128xf32, #tpu.memory_space<vmem>>, vector<1x1x1x128xf32>
    %35 = vector.shape_cast %34 : vector<1x1x1x128xf32> to vector<1x128xf32>
    %c0_i32_23 = arith.constant 0 : i32
    %36 = vector.broadcast %c0_i32_23 : i32 to vector<1x128xi32>
    %37 = arith.cmpi eq, %21, %36 : vector<1x128xi32>
    %38 = arith.subf %35, %32 : vector<1x128xf32>
    %39 = math.exp %38 : vector<1x128xf32>
    %40 = arith.select %37, %35, %33 : vector<1x128xi1>, vector<1x128xf32>
    %cst_24 = arith.constant 0.000000e+00 : f32
    %41 = vector.broadcast %cst_24 : f32 to vector<1x128xf32>
    %42 = arith.select %37, %16, %41 : vector<1x128xi1>, vector<1x128xf32>
    %cst_25 = arith.constant dense<0.000000e+00> : vector<128xf32>
    %43 = vector.multi_reduction <add>, %42, %cst_25 [0] : vector<1x128xf32> to vector<128xf32>
    %44 = vector.shape_cast %43 : vector<128xf32> to vector<1x128xf32>
    %c0_26 = arith.constant 0 : index
    %c1_27 = arith.constant 1 : index
    %c0_28 = arith.constant 0 : index
    %c0_29 = arith.constant 0 : index
    %45 = vector.load %arg2[%c0_26, %c1_27, %c0_28, %c0_29] : memref<2x4x1x128xf32, #tpu.memory_space<vmem>>, vector<1x1x1x128xf32>
    %46 = vector.shape_cast %45 : vector<1x1x1x128xf32> to vector<1x128xf32>
    %c1_i32_30 = arith.constant 1 : i32
    %47 = vector.broadcast %c1_i32_30 : i32 to vector<1x128xi32>
    %48 = arith.cmpi eq, %21, %47 : vector<1x128xi32>
    %49 = arith.subf %46, %32 : vector<1x128xf32>
    %50 = math.exp %49 : vector<1x128xf32>
    %51 = arith.addf %39, %50 : vector<1x128xf32>
    %52 = arith.select %48, %46, %40 : vector<1x128xi1>, vector<1x128xf32>
    %cst_31 = arith.constant 0.000000e+00 : f32
    %53 = vector.broadcast %cst_31 : f32 to vector<1x128xf32>
    %54 = arith.select %48, %16, %53 : vector<1x128xi1>, vector<1x128xf32>
    %cst_32 = arith.constant dense<0.000000e+00> : vector<128xf32>
    %55 = vector.multi_reduction <add>, %54, %cst_32 [0] : vector<1x128xf32> to vector<128xf32>
    %56 = vector.shape_cast %55 : vector<128xf32> to vector<1x128xf32>
    %c0_33 = arith.constant 0 : index
    %c2_34 = arith.constant 2 : index
    %c0_35 = arith.constant 0 : index
    %c0_36 = arith.constant 0 : index
    %57 = vector.load %arg2[%c0_33, %c2_34, %c0_35, %c0_36] : memref<2x4x1x128xf32, #tpu.memory_space<vmem>>, vector<1x1x1x128xf32>
    %58 = vector.shape_cast %57 : vector<1x1x1x128xf32> to vector<1x128xf32>
    %c2_i32 = arith.constant 2 : i32
    %59 = vector.broadcast %c2_i32 : i32 to vector<1x128xi32>
    %60 = arith.cmpi eq, %21, %59 : vector<1x128xi32>
    %61 = arith.subf %58, %32 : vector<1x128xf32>
    %62 = math.exp %61 : vector<1x128xf32>
    %63 = arith.addf %51, %62 : vector<1x128xf32>
    %64 = arith.select %60, %58, %52 : vector<1x128xi1>, vector<1x128xf32>
    %cst_37 = arith.constant 0.000000e+00 : f32
    %65 = vector.broadcast %cst_37 : f32 to vector<1x128xf32>
    %66 = arith.select %60, %16, %65 : vector<1x128xi1>, vector<1x128xf32>
    %cst_38 = arith.constant dense<0.000000e+00> : vector<128xf32>
    %67 = vector.multi_reduction <add>, %66, %cst_38 [0] : vector<1x128xf32> to vector<128xf32>
    %68 = vector.shape_cast %67 : vector<128xf32> to vector<1x128xf32>
    %c0_39 = arith.constant 0 : index
    %c3_40 = arith.constant 3 : index
    %c0_41 = arith.constant 0 : index
    %c0_42 = arith.constant 0 : index
    %69 = vector.load %arg2[%c0_39, %c3_40, %c0_41, %c0_42] : memref<2x4x1x128xf32, #tpu.memory_space<vmem>>, vector<1x1x1x128xf32>
    %70 = vector.shape_cast %69 : vector<1x1x1x128xf32> to vector<1x128xf32>
    %c3_i32 = arith.constant 3 : i32
    %71 = vector.broadcast %c3_i32 : i32 to vector<1x128xi32>
    %72 = arith.cmpi eq, %21, %71 : vector<1x128xi32>
    %73 = arith.subf %70, %32 : vector<1x128xf32>
    %74 = math.exp %73 : vector<1x128xf32>
    %75 = arith.addf %63, %74 : vector<1x128xf32>
    %76 = arith.select %72, %70, %64 : vector<1x128xi1>, vector<1x128xf32>
    %cst_43 = arith.constant 0.000000e+00 : f32
    %77 = vector.broadcast %cst_43 : f32 to vector<1x128xf32>
    %78 = arith.select %72, %16, %77 : vector<1x128xi1>, vector<1x128xf32>
    %cst_44 = arith.constant dense<0.000000e+00> : vector<128xf32>
    %79 = vector.multi_reduction <add>, %78, %cst_44 [0] : vector<1x128xf32> to vector<128xf32>
    %80 = vector.shape_cast %79 : vector<128xf32> to vector<1x128xf32>
    %81 = tpu.reciprocal %75 {approx = true} : vector<1x128xf32> -> vector<1x128xf32>
    %82 = arith.mulf %75, %81 : vector<1x128xf32>
    %cst_45 = arith.constant 2.000000e+00 : f32
    %83 = vector.broadcast %cst_45 : f32 to vector<1x128xf32>
    %84 = arith.subf %83, %82 : vector<1x128xf32>
    %85 = arith.mulf %81, %84 : vector<1x128xf32>
    %86 = math.log %75 : vector<1x128xf32>
    %87 = arith.addf %86, %32 : vector<1x128xf32>
    %88 = arith.subf %87, %76 : vector<1x128xf32>
    %89 = arith.addf %17, %88 : vector<1x128xf32>
    %90 = math.exp %32 : vector<1x128xf32>
    %91 = arith.mulf %75, %90 : vector<1x128xf32>
    %92 = arith.addf %18, %91 : vector<1x128xf32>
    %93 = arith.mulf %85, %16 : vector<1x128xf32>
    %94 = arith.mulf %39, %93 : vector<1x128xf32>
    %c0_i32_46 = arith.constant 0 : i32
    %95 = vector.broadcast %c0_i32_46 : i32 to vector<1x128xi32>
    %96 = arith.cmpi eq, %21, %95 : vector<1x128xi32>
    %cst_47 = arith.constant 0.000000e+00 : f32
    %97 = vector.broadcast %cst_47 : f32 to vector<1x128xf32>
    %98 = arith.select %96, %94, %97 : vector<1x128xi1>, vector<1x128xf32>
    %cst_48 = arith.constant dense<0.000000e+00> : vector<128xf32>
    %99 = vector.multi_reduction <add>, %98, %cst_48 [0] : vector<1x128xf32> to vector<128xf32>
    %100 = vector.shape_cast %99 : vector<128xf32> to vector<1x128xf32>
    %cst_49 = arith.constant dense<0.000000e+00> : vector<128xf32>
    %101 = vector.multi_reduction <add>, %94, %cst_49 [0] : vector<1x128xf32> to vector<128xf32>
    %102 = vector.shape_cast %101 : vector<128xf32> to vector<1x128xf32>
    %103 = arith.mulf %50, %93 : vector<1x128xf32>
    %c1_i32_50 = arith.constant 1 : i32
    %104 = vector.broadcast %c1_i32_50 : i32 to vector<1x128xi32>
    %105 = arith.cmpi eq, %21, %104 : vector<1x128xi32>
    %cst_51 = arith.constant 0.000000e+00 : f32
    %106 = vector.broadcast %cst_51 : f32 to vector<1x128xf32>
    %107 = arith.select %105, %103, %106 : vector<1x128xi1>, vector<1x128xf32>
    %cst_52 = arith.constant dense<0.000000e+00> : vector<128xf32>
    %108 = vector.multi_reduction <add>, %107, %cst_52 [0] : vector<1x128xf32> to vector<128xf32>
    %109 = vector.shape_cast %108 : vector<128xf32> to vector<1x128xf32>
    %cst_53 = arith.constant dense<0.000000e+00> : vector<128xf32>
    %110 = vector.multi_reduction <add>, %103, %cst_53 [0] : vector<1x128xf32> to vector<128xf32>
    %111 = vector.shape_cast %110 : vector<128xf32> to vector<1x128xf32>
    %112 = arith.mulf %62, %93 : vector<1x128xf32>
    %c2_i32_54 = arith.constant 2 : i32
    %113 = vector.broadcast %c2_i32_54 : i32 to vector<1x128xi32>
    %114 = arith.cmpi eq, %21, %113 : vector<1x128xi32>
    %cst_55 = arith.constant 0.000000e+00 : f32
    %115 = vector.broadcast %cst_55 : f32 to vector<1x128xf32>
    %116 = arith.select %114, %112, %115 : vector<1x128xi1>, vector<1x128xf32>
    %cst_56 = arith.constant dense<0.000000e+00> : vector<128xf32>
    %117 = vector.multi_reduction <add>, %116, %cst_56 [0] : vector<1x128xf32> to vector<128xf32>
    %118 = vector.shape_cast %117 : vector<128xf32> to vector<1x128xf32>
    %cst_57 = arith.constant dense<0.000000e+00> : vector<128xf32>
    %119 = vector.multi_reduction <add>, %112, %cst_57 [0] : vector<1x128xf32> to vector<128xf32>
    %120 = vector.shape_cast %119 : vector<128xf32> to vector<1x128xf32>
    %121 = arith.mulf %74, %93 : vector<1x128xf32>
    %c3_i32_58 = arith.constant 3 : i32
    %122 = vector.broadcast %c3_i32_58 : i32 to vector<1x128xi32>
    %123 = arith.cmpi eq, %21, %122 : vector<1x128xi32>
    %cst_59 = arith.constant 0.000000e+00 : f32
    %124 = vector.broadcast %cst_59 : f32 to vector<1x128xf32>
    %125 = arith.select %123, %121, %124 : vector<1x128xi1>, vector<1x128xf32>
    %cst_60 = arith.constant dense<0.000000e+00> : vector<128xf32>
    %126 = vector.multi_reduction <add>, %125, %cst_60 [0] : vector<1x128xf32> to vector<128xf32>
    %127 = vector.shape_cast %126 : vector<128xf32> to vector<1x128xf32>
    %cst_61 = arith.constant dense<0.000000e+00> : vector<128xf32>
    %128 = vector.multi_reduction <add>, %121, %cst_61 [0] : vector<1x128xf32> to vector<128xf32>
    %129 = vector.shape_cast %128 : vector<128xf32> to vector<1x128xf32>
    %c1_62 = arith.constant 1 : index
    %c0_63 = arith.constant 0 : index
    %c0_64 = arith.constant 0 : index
    %130 = vector.load %arg3[%c1_62, %c0_63, %c0_64] : memref<2x1x128xi8, #tpu.memory_space<vmem>>, vector<1x1x128xi8>
    %131 = vector.shape_cast %130 : vector<1x1x128xi8> to vector<1x128xi8>
    %132 = arith.extsi %131 : vector<1x128xi8> to vector<1x128xi32>
    %c1_65 = arith.constant 1 : index
    %c0_66 = arith.constant 0 : index
    %c0_67 = arith.constant 0 : index
    %c0_68 = arith.constant 0 : index
    %133 = vector.load %arg2[%c1_65, %c0_66, %c0_67, %c0_68] : memref<2x4x1x128xf32, #tpu.memory_space<vmem>>, vector<1x1x1x128xf32>
    %134 = vector.shape_cast %133 : vector<1x1x1x128xf32> to vector<1x128xf32>
    %c1_69 = arith.constant 1 : index
    %c1_70 = arith.constant 1 : index
    %c0_71 = arith.constant 0 : index
    %c0_72 = arith.constant 0 : index
    %135 = vector.load %arg2[%c1_69, %c1_70, %c0_71, %c0_72] : memref<2x4x1x128xf32, #tpu.memory_space<vmem>>, vector<1x1x1x128xf32>
    %136 = vector.shape_cast %135 : vector<1x1x1x128xf32> to vector<1x128xf32>
    %137 = arith.maximumf %134, %136 : vector<1x128xf32>
    %c1_73 = arith.constant 1 : index
    %c2_74 = arith.constant 2 : index
    %c0_75 = arith.constant 0 : index
    %c0_76 = arith.constant 0 : index
    %138 = vector.load %arg2[%c1_73, %c2_74, %c0_75, %c0_76] : memref<2x4x1x128xf32, #tpu.memory_space<vmem>>, vector<1x1x1x128xf32>
    %139 = vector.shape_cast %138 : vector<1x1x1x128xf32> to vector<1x128xf32>
    %140 = arith.maximumf %137, %139 : vector<1x128xf32>
    %c1_77 = arith.constant 1 : index
    %c3_78 = arith.constant 3 : index
    %c0_79 = arith.constant 0 : index
    %c0_80 = arith.constant 0 : index
    %141 = vector.load %arg2[%c1_77, %c3_78, %c0_79, %c0_80] : memref<2x4x1x128xf32, #tpu.memory_space<vmem>>, vector<1x1x1x128xf32>
    %142 = vector.shape_cast %141 : vector<1x1x1x128xf32> to vector<1x128xf32>
    %143 = arith.maximumf %140, %142 : vector<1x128xf32>
    %cst_81 = arith.constant 0.000000e+00 : f32
    %144 = vector.broadcast %cst_81 : f32 to vector<1x128xf32>
    %c1_82 = arith.constant 1 : index
    %c0_83 = arith.constant 0 : index
    %c0_84 = arith.constant 0 : index
    %c0_85 = arith.constant 0 : index
    %145 = vector.load %arg2[%c1_82, %c0_83, %c0_84, %c0_85] : memref<2x4x1x128xf32, #tpu.memory_space<vmem>>, vector<1x1x1x128xf32>
    %146 = vector.shape_cast %145 : vector<1x1x1x128xf32> to vector<1x128xf32>
    %c0_i32_86 = arith.constant 0 : i32
    %147 = vector.broadcast %c0_i32_86 : i32 to vector<1x128xi32>
    %148 = arith.cmpi eq, %132, %147 : vector<1x128xi32>
    %149 = arith.subf %146, %143 : vector<1x128xf32>
    %150 = math.exp %149 : vector<1x128xf32>
    %151 = arith.select %148, %146, %144 : vector<1x128xi1>, vector<1x128xf32>
    %cst_87 = arith.constant 0.000000e+00 : f32
    %152 = vector.broadcast %cst_87 : f32 to vector<1x128xf32>
    %153 = arith.select %148, %16, %152 : vector<1x128xi1>, vector<1x128xf32>
    %cst_88 = arith.constant dense<0.000000e+00> : vector<128xf32>
    %154 = vector.multi_reduction <add>, %153, %cst_88 [0] : vector<1x128xf32> to vector<128xf32>
    %155 = vector.shape_cast %154 : vector<128xf32> to vector<1x128xf32>
    %c1_89 = arith.constant 1 : index
    %c1_90 = arith.constant 1 : index
    %c0_91 = arith.constant 0 : index
    %c0_92 = arith.constant 0 : index
    %156 = vector.load %arg2[%c1_89, %c1_90, %c0_91, %c0_92] : memref<2x4x1x128xf32, #tpu.memory_space<vmem>>, vector<1x1x1x128xf32>
    %157 = vector.shape_cast %156 : vector<1x1x1x128xf32> to vector<1x128xf32>
    %c1_i32_93 = arith.constant 1 : i32
    %158 = vector.broadcast %c1_i32_93 : i32 to vector<1x128xi32>
    %159 = arith.cmpi eq, %132, %158 : vector<1x128xi32>
    %160 = arith.subf %157, %143 : vector<1x128xf32>
    %161 = math.exp %160 : vector<1x128xf32>
    %162 = arith.addf %150, %161 : vector<1x128xf32>
    %163 = arith.select %159, %157, %151 : vector<1x128xi1>, vector<1x128xf32>
    %cst_94 = arith.constant 0.000000e+00 : f32
    %164 = vector.broadcast %cst_94 : f32 to vector<1x128xf32>
    %165 = arith.select %159, %16, %164 : vector<1x128xi1>, vector<1x128xf32>
    %cst_95 = arith.constant dense<0.000000e+00> : vector<128xf32>
    %166 = vector.multi_reduction <add>, %165, %cst_95 [0] : vector<1x128xf32> to vector<128xf32>
    %167 = vector.shape_cast %166 : vector<128xf32> to vector<1x128xf32>
    %c1_96 = arith.constant 1 : index
    %c2_97 = arith.constant 2 : index
    %c0_98 = arith.constant 0 : index
    %c0_99 = arith.constant 0 : index
    %168 = vector.load %arg2[%c1_96, %c2_97, %c0_98, %c0_99] : memref<2x4x1x128xf32, #tpu.memory_space<vmem>>, vector<1x1x1x128xf32>
    %169 = vector.shape_cast %168 : vector<1x1x1x128xf32> to vector<1x128xf32>
    %c2_i32_100 = arith.constant 2 : i32
    %170 = vector.broadcast %c2_i32_100 : i32 to vector<1x128xi32>
    %171 = arith.cmpi eq, %132, %170 : vector<1x128xi32>
    %172 = arith.subf %169, %143 : vector<1x128xf32>
    %173 = math.exp %172 : vector<1x128xf32>
    %174 = arith.addf %162, %173 : vector<1x128xf32>
    %175 = arith.select %171, %169, %163 : vector<1x128xi1>, vector<1x128xf32>
    %cst_101 = arith.constant 0.000000e+00 : f32
    %176 = vector.broadcast %cst_101 : f32 to vector<1x128xf32>
    %177 = arith.select %171, %16, %176 : vector<1x128xi1>, vector<1x128xf32>
    %cst_102 = arith.constant dense<0.000000e+00> : vector<128xf32>
    %178 = vector.multi_reduction <add>, %177, %cst_102 [0] : vector<1x128xf32> to vector<128xf32>
    %179 = vector.shape_cast %178 : vector<128xf32> to vector<1x128xf32>
    %c1_103 = arith.constant 1 : index
    %c3_104 = arith.constant 3 : index
    %c0_105 = arith.constant 0 : index
    %c0_106 = arith.constant 0 : index
    %180 = vector.load %arg2[%c1_103, %c3_104, %c0_105, %c0_106] : memref<2x4x1x128xf32, #tpu.memory_space<vmem>>, vector<1x1x1x128xf32>
    %181 = vector.shape_cast %180 : vector<1x1x1x128xf32> to vector<1x128xf32>
    %c3_i32_107 = arith.constant 3 : i32
    %182 = vector.broadcast %c3_i32_107 : i32 to vector<1x128xi32>
    %183 = arith.cmpi eq, %132, %182 : vector<1x128xi32>
    %184 = arith.subf %181, %143 : vector<1x128xf32>
    %185 = math.exp %184 : vector<1x128xf32>
    %186 = arith.addf %174, %185 : vector<1x128xf32>
    %187 = arith.select %183, %181, %175 : vector<1x128xi1>, vector<1x128xf32>
    %cst_108 = arith.constant 0.000000e+00 : f32
    %188 = vector.broadcast %cst_108 : f32 to vector<1x128xf32>
    %189 = arith.select %183, %16, %188 : vector<1x128xi1>, vector<1x128xf32>
    %cst_109 = arith.constant dense<0.000000e+00> : vector<128xf32>
    %190 = vector.multi_reduction <add>, %189, %cst_109 [0] : vector<1x128xf32> to vector<128xf32>
    %191 = vector.shape_cast %190 : vector<128xf32> to vector<1x128xf32>
    %192 = tpu.reciprocal %186 {approx = true} : vector<1x128xf32> -> vector<1x128xf32>
    %193 = arith.mulf %186, %192 : vector<1x128xf32>
    %cst_110 = arith.constant 2.000000e+00 : f32
    %194 = vector.broadcast %cst_110 : f32 to vector<1x128xf32>
    %195 = arith.subf %194, %193 : vector<1x128xf32>
    %196 = arith.mulf %192, %195 : vector<1x128xf32>
    %197 = math.log %186 : vector<1x128xf32>
    %198 = arith.addf %197, %143 : vector<1x128xf32>
    %199 = arith.subf %198, %187 : vector<1x128xf32>
    %200 = arith.addf %89, %199 : vector<1x128xf32>
    %201 = math.exp %143 : vector<1x128xf32>
    %202 = arith.mulf %186, %201 : vector<1x128xf32>
    %203 = arith.addf %92, %202 : vector<1x128xf32>
    %204 = arith.mulf %196, %16 : vector<1x128xf32>
    %205 = arith.mulf %150, %204 : vector<1x128xf32>
    %c0_i32_111 = arith.constant 0 : i32
    %206 = vector.broadcast %c0_i32_111 : i32 to vector<1x128xi32>
    %207 = arith.cmpi eq, %132, %206 : vector<1x128xi32>
    %cst_112 = arith.constant 0.000000e+00 : f32
    %208 = vector.broadcast %cst_112 : f32 to vector<1x128xf32>
    %209 = arith.select %207, %205, %208 : vector<1x128xi1>, vector<1x128xf32>
    %cst_113 = arith.constant dense<0.000000e+00> : vector<128xf32>
    %210 = vector.multi_reduction <add>, %209, %cst_113 [0] : vector<1x128xf32> to vector<128xf32>
    %211 = vector.shape_cast %210 : vector<128xf32> to vector<1x128xf32>
    %cst_114 = arith.constant dense<0.000000e+00> : vector<128xf32>
    %212 = vector.multi_reduction <add>, %205, %cst_114 [0] : vector<1x128xf32> to vector<128xf32>
    %213 = vector.shape_cast %212 : vector<128xf32> to vector<1x128xf32>
    %214 = arith.mulf %161, %204 : vector<1x128xf32>
    %c1_i32_115 = arith.constant 1 : i32
    %215 = vector.broadcast %c1_i32_115 : i32 to vector<1x128xi32>
    %216 = arith.cmpi eq, %132, %215 : vector<1x128xi32>
    %cst_116 = arith.constant 0.000000e+00 : f32
    %217 = vector.broadcast %cst_116 : f32 to vector<1x128xf32>
    %218 = arith.select %216, %214, %217 : vector<1x128xi1>, vector<1x128xf32>
    %cst_117 = arith.constant dense<0.000000e+00> : vector<128xf32>
    %219 = vector.multi_reduction <add>, %218, %cst_117 [0] : vector<1x128xf32> to vector<128xf32>
    %220 = vector.shape_cast %219 : vector<128xf32> to vector<1x128xf32>
    %cst_118 = arith.constant dense<0.000000e+00> : vector<128xf32>
    %221 = vector.multi_reduction <add>, %214, %cst_118 [0] : vector<1x128xf32> to vector<128xf32>
    %222 = vector.shape_cast %221 : vector<128xf32> to vector<1x128xf32>
    %223 = arith.mulf %173, %204 : vector<1x128xf32>
    %c2_i32_119 = arith.constant 2 : i32
    %224 = vector.broadcast %c2_i32_119 : i32 to vector<1x128xi32>
    %225 = arith.cmpi eq, %132, %224 : vector<1x128xi32>
    %cst_120 = arith.constant 0.000000e+00 : f32
    %226 = vector.broadcast %cst_120 : f32 to vector<1x128xf32>
    %227 = arith.select %225, %223, %226 : vector<1x128xi1>, vector<1x128xf32>
    %cst_121 = arith.constant dense<0.000000e+00> : vector<128xf32>
    %228 = vector.multi_reduction <add>, %227, %cst_121 [0] : vector<1x128xf32> to vector<128xf32>
    %229 = vector.shape_cast %228 : vector<128xf32> to vector<1x128xf32>
    %cst_122 = arith.constant dense<0.000000e+00> : vector<128xf32>
    %230 = vector.multi_reduction <add>, %223, %cst_122 [0] : vector<1x128xf32> to vector<128xf32>
    %231 = vector.shape_cast %230 : vector<128xf32> to vector<1x128xf32>
    %232 = arith.mulf %185, %204 : vector<1x128xf32>
    %c3_i32_123 = arith.constant 3 : i32
    %233 = vector.broadcast %c3_i32_123 : i32 to vector<1x128xi32>
    %234 = arith.cmpi eq, %132, %233 : vector<1x128xi32>
    %cst_124 = arith.constant 0.000000e+00 : f32
    %235 = vector.broadcast %cst_124 : f32 to vector<1x128xf32>
    %236 = arith.select %234, %232, %235 : vector<1x128xi1>, vector<1x128xf32>
    %cst_125 = arith.constant dense<0.000000e+00> : vector<128xf32>
    %237 = vector.multi_reduction <add>, %236, %cst_125 [0] : vector<1x128xf32> to vector<128xf32>
    %238 = vector.shape_cast %237 : vector<128xf32> to vector<1x128xf32>
    %cst_126 = arith.constant dense<0.000000e+00> : vector<128xf32>
    %239 = vector.multi_reduction <add>, %232, %cst_126 [0] : vector<1x128xf32> to vector<128xf32>
    %240 = vector.shape_cast %239 : vector<128xf32> to vector<1x128xf32>
    %c0_i32_127 = arith.constant 0 : i32
    %241 = arith.cmpi eq, %arg0, %c0_i32_127 : i32
    %c0_i32_128 = arith.constant 0 : i32
    %242 = arith.cmpi eq, %arg1, %c0_i32_128 : i32
    %243 = arith.andi %241, %242 : i1
    %244 = arith.extui %243 : i1 to i32
    %c0_i32_129 = arith.constant 0 : i32
    %245 = arith.cmpi ne, %244, %c0_i32_129 : i32
    scf.if %245 {
      %263 = tpu.iota {dimensions = array<i32: 0>} : vector<1x128xi32>
      %264 = tpu.iota {dimensions = array<i32: 1>} : vector<1x128xi32>
      %c128_i32_141 = arith.constant 128 : i32
      %265 = vector.broadcast %c128_i32_141 : i32 to vector<1x128xi32>
      %266 = arith.muli %263, %265 : vector<1x128xi32>
      %267 = arith.addi %266, %264 : vector<1x128xi32>
      %c2_i32_142 = arith.constant 2 : i32
      %268 = vector.broadcast %c2_i32_142 : i32 to vector<1x128xi32>
      %269 = arith.cmpi slt, %267, %268 : vector<1x128xi32>
      %270 = arith.extui %269 : vector<1x128xi1> to vector<1x128xi32>
      %271 = arith.sitofp %270 : vector<1x128xi32> to vector<1x128xf32>
      %cst_143 = arith.constant 0.000000e+00 : f32
      %272 = vector.broadcast %cst_143 : f32 to vector<1x128xf32>
      %c0_144 = arith.constant 0 : index
      %c0_145 = arith.constant 0 : index
      %c0_146 = arith.constant 0 : index
      %273 = vector.load %arg3[%c0_144, %c0_145, %c0_146] : memref<2x1x128xi8, #tpu.memory_space<vmem>>, vector<1x1x128xi8>
      %274 = vector.shape_cast %273 : vector<1x1x128xi8> to vector<1x128xi8>
      %275 = arith.extsi %274 : vector<1x128xi8> to vector<1x128xi32>
      %cst_147 = arith.constant 0.000000e+00 : f32
      %276 = vector.broadcast %cst_147 : f32 to vector<1x128xf32>
      %c0_148 = arith.constant 0 : index
      %c0_149 = arith.constant 0 : index
      %277 = memref.load %arg4[%c0_148, %c0_149] : memref<4x4xf32, #tpu.memory_space<smem>>
      %c0_i32_150 = arith.constant 0 : i32
      %278 = vector.broadcast %c0_i32_150 : i32 to vector<1x128xi32>
      %279 = arith.cmpi eq, %275, %278 : vector<1x128xi32>
      %280 = arith.extui %279 : vector<1x128xi1> to vector<1x128xi32>
      %281 = arith.sitofp %280 : vector<1x128xi32> to vector<1x128xf32>
      %282 = vector.broadcast %277 : f32 to vector<1x128xf32>
      %283 = arith.mulf %282, %281 : vector<1x128xf32>
      %284 = arith.addf %276, %283 : vector<1x128xf32>
      %c1_151 = arith.constant 1 : index
      %c0_152 = arith.constant 0 : index
      %285 = memref.load %arg4[%c1_151, %c0_152] : memref<4x4xf32, #tpu.memory_space<smem>>
      %c1_i32_153 = arith.constant 1 : i32
      %286 = vector.broadcast %c1_i32_153 : i32 to vector<1x128xi32>
      %287 = arith.cmpi eq, %275, %286 : vector<1x128xi32>
      %288 = arith.extui %287 : vector<1x128xi1> to vector<1x128xi32>
      %289 = arith.sitofp %288 : vector<1x128xi32> to vector<1x128xf32>
      %290 = vector.broadcast %285 : f32 to vector<1x128xf32>
      %291 = arith.mulf %290, %289 : vector<1x128xf32>
      %292 = arith.addf %284, %291 : vector<1x128xf32>
      %c2_154 = arith.constant 2 : index
      %c0_155 = arith.constant 0 : index
      %293 = memref.load %arg4[%c2_154, %c0_155] : memref<4x4xf32, #tpu.memory_space<smem>>
      %c2_i32_156 = arith.constant 2 : i32
      %294 = vector.broadcast %c2_i32_156 : i32 to vector<1x128xi32>
      %295 = arith.cmpi eq, %275, %294 : vector<1x128xi32>
      %296 = arith.extui %295 : vector<1x128xi1> to vector<1x128xi32>
      %297 = arith.sitofp %296 : vector<1x128xi32> to vector<1x128xf32>
      %298 = vector.broadcast %293 : f32 to vector<1x128xf32>
      %299 = arith.mulf %298, %297 : vector<1x128xf32>
      %300 = arith.addf %292, %299 : vector<1x128xf32>
      %c3_157 = arith.constant 3 : index
      %c0_158 = arith.constant 0 : index
      %301 = memref.load %arg4[%c3_157, %c0_158] : memref<4x4xf32, #tpu.memory_space<smem>>
      %c3_i32_159 = arith.constant 3 : i32
      %302 = vector.broadcast %c3_i32_159 : i32 to vector<1x128xi32>
      %303 = arith.cmpi eq, %275, %302 : vector<1x128xi32>
      %304 = arith.extui %303 : vector<1x128xi1> to vector<1x128xi32>
      %305 = arith.sitofp %304 : vector<1x128xi32> to vector<1x128xf32>
      %306 = vector.broadcast %301 : f32 to vector<1x128xf32>
      %307 = arith.mulf %306, %305 : vector<1x128xf32>
      %308 = arith.addf %300, %307 : vector<1x128xf32>
      %c0_160 = arith.constant 0 : index
      %c0_161 = arith.constant 0 : index
      %c0_162 = arith.constant 0 : index
      %c0_163 = arith.constant 0 : index
      %309 = vector.load %arg2[%c0_160, %c0_161, %c0_162, %c0_163] : memref<2x4x1x128xf32, #tpu.memory_space<vmem>>, vector<1x1x1x128xf32>
      %310 = vector.shape_cast %309 : vector<1x1x1x128xf32> to vector<1x128xf32>
      %311 = math.exp %310 : vector<1x128xf32>
      %312 = arith.mulf %308, %311 : vector<1x128xf32>
      %313 = arith.addf %272, %312 : vector<1x128xf32>
      %cst_164 = arith.constant 0.000000e+00 : f32
      %314 = vector.broadcast %cst_164 : f32 to vector<1x128xf32>
      %c0_165 = arith.constant 0 : index
      %c1_166 = arith.constant 1 : index
      %315 = memref.load %arg4[%c0_165, %c1_166] : memref<4x4xf32, #tpu.memory_space<smem>>
      %c0_i32_167 = arith.constant 0 : i32
      %316 = vector.broadcast %c0_i32_167 : i32 to vector<1x128xi32>
      %317 = arith.cmpi eq, %275, %316 : vector<1x128xi32>
      %318 = arith.extui %317 : vector<1x128xi1> to vector<1x128xi32>
      %319 = arith.sitofp %318 : vector<1x128xi32> to vector<1x128xf32>
      %320 = vector.broadcast %315 : f32 to vector<1x128xf32>
      %321 = arith.mulf %320, %319 : vector<1x128xf32>
      %322 = arith.addf %314, %321 : vector<1x128xf32>
      %c1_168 = arith.constant 1 : index
      %c1_169 = arith.constant 1 : index
      %323 = memref.load %arg4[%c1_168, %c1_169] : memref<4x4xf32, #tpu.memory_space<smem>>
      %c1_i32_170 = arith.constant 1 : i32
      %324 = vector.broadcast %c1_i32_170 : i32 to vector<1x128xi32>
      %325 = arith.cmpi eq, %275, %324 : vector<1x128xi32>
      %326 = arith.extui %325 : vector<1x128xi1> to vector<1x128xi32>
      %327 = arith.sitofp %326 : vector<1x128xi32> to vector<1x128xf32>
      %328 = vector.broadcast %323 : f32 to vector<1x128xf32>
      %329 = arith.mulf %328, %327 : vector<1x128xf32>
      %330 = arith.addf %322, %329 : vector<1x128xf32>
      %c2_171 = arith.constant 2 : index
      %c1_172 = arith.constant 1 : index
      %331 = memref.load %arg4[%c2_171, %c1_172] : memref<4x4xf32, #tpu.memory_space<smem>>
      %c2_i32_173 = arith.constant 2 : i32
      %332 = vector.broadcast %c2_i32_173 : i32 to vector<1x128xi32>
      %333 = arith.cmpi eq, %275, %332 : vector<1x128xi32>
      %334 = arith.extui %333 : vector<1x128xi1> to vector<1x128xi32>
      %335 = arith.sitofp %334 : vector<1x128xi32> to vector<1x128xf32>
      %336 = vector.broadcast %331 : f32 to vector<1x128xf32>
      %337 = arith.mulf %336, %335 : vector<1x128xf32>
      %338 = arith.addf %330, %337 : vector<1x128xf32>
      %c3_174 = arith.constant 3 : index
      %c1_175 = arith.constant 1 : index
      %339 = memref.load %arg4[%c3_174, %c1_175] : memref<4x4xf32, #tpu.memory_space<smem>>
      %c3_i32_176 = arith.constant 3 : i32
      %340 = vector.broadcast %c3_i32_176 : i32 to vector<1x128xi32>
      %341 = arith.cmpi eq, %275, %340 : vector<1x128xi32>
      %342 = arith.extui %341 : vector<1x128xi1> to vector<1x128xi32>
      %343 = arith.sitofp %342 : vector<1x128xi32> to vector<1x128xf32>
      %344 = vector.broadcast %339 : f32 to vector<1x128xf32>
      %345 = arith.mulf %344, %343 : vector<1x128xf32>
      %346 = arith.addf %338, %345 : vector<1x128xf32>
      %c0_177 = arith.constant 0 : index
      %c1_178 = arith.constant 1 : index
      %c0_179 = arith.constant 0 : index
      %c0_180 = arith.constant 0 : index
      %347 = vector.load %arg2[%c0_177, %c1_178, %c0_179, %c0_180] : memref<2x4x1x128xf32, #tpu.memory_space<vmem>>, vector<1x1x1x128xf32>
      %348 = vector.shape_cast %347 : vector<1x1x1x128xf32> to vector<1x128xf32>
      %349 = math.exp %348 : vector<1x128xf32>
      %350 = arith.mulf %346, %349 : vector<1x128xf32>
      %351 = arith.addf %313, %350 : vector<1x128xf32>
      %cst_181 = arith.constant 0.000000e+00 : f32
      %352 = vector.broadcast %cst_181 : f32 to vector<1x128xf32>
      %c0_182 = arith.constant 0 : index
      %c2_183 = arith.constant 2 : index
      %353 = memref.load %arg4[%c0_182, %c2_183] : memref<4x4xf32, #tpu.memory_space<smem>>
      %c0_i32_184 = arith.constant 0 : i32
      %354 = vector.broadcast %c0_i32_184 : i32 to vector<1x128xi32>
      %355 = arith.cmpi eq, %275, %354 : vector<1x128xi32>
      %356 = arith.extui %355 : vector<1x128xi1> to vector<1x128xi32>
      %357 = arith.sitofp %356 : vector<1x128xi32> to vector<1x128xf32>
      %358 = vector.broadcast %353 : f32 to vector<1x128xf32>
      %359 = arith.mulf %358, %357 : vector<1x128xf32>
      %360 = arith.addf %352, %359 : vector<1x128xf32>
      %c1_185 = arith.constant 1 : index
      %c2_186 = arith.constant 2 : index
      %361 = memref.load %arg4[%c1_185, %c2_186] : memref<4x4xf32, #tpu.memory_space<smem>>
      %c1_i32_187 = arith.constant 1 : i32
      %362 = vector.broadcast %c1_i32_187 : i32 to vector<1x128xi32>
      %363 = arith.cmpi eq, %275, %362 : vector<1x128xi32>
      %364 = arith.extui %363 : vector<1x128xi1> to vector<1x128xi32>
      %365 = arith.sitofp %364 : vector<1x128xi32> to vector<1x128xf32>
      %366 = vector.broadcast %361 : f32 to vector<1x128xf32>
      %367 = arith.mulf %366, %365 : vector<1x128xf32>
      %368 = arith.addf %360, %367 : vector<1x128xf32>
      %c2_188 = arith.constant 2 : index
      %c2_189 = arith.constant 2 : index
      %369 = memref.load %arg4[%c2_188, %c2_189] : memref<4x4xf32, #tpu.memory_space<smem>>
      %c2_i32_190 = arith.constant 2 : i32
      %370 = vector.broadcast %c2_i32_190 : i32 to vector<1x128xi32>
      %371 = arith.cmpi eq, %275, %370 : vector<1x128xi32>
      %372 = arith.extui %371 : vector<1x128xi1> to vector<1x128xi32>
      %373 = arith.sitofp %372 : vector<1x128xi32> to vector<1x128xf32>
      %374 = vector.broadcast %369 : f32 to vector<1x128xf32>
      %375 = arith.mulf %374, %373 : vector<1x128xf32>
      %376 = arith.addf %368, %375 : vector<1x128xf32>
      %c3_191 = arith.constant 3 : index
      %c2_192 = arith.constant 2 : index
      %377 = memref.load %arg4[%c3_191, %c2_192] : memref<4x4xf32, #tpu.memory_space<smem>>
      %c3_i32_193 = arith.constant 3 : i32
      %378 = vector.broadcast %c3_i32_193 : i32 to vector<1x128xi32>
      %379 = arith.cmpi eq, %275, %378 : vector<1x128xi32>
      %380 = arith.extui %379 : vector<1x128xi1> to vector<1x128xi32>
      %381 = arith.sitofp %380 : vector<1x128xi32> to vector<1x128xf32>
      %382 = vector.broadcast %377 : f32 to vector<1x128xf32>
      %383 = arith.mulf %382, %381 : vector<1x128xf32>
      %384 = arith.addf %376, %383 : vector<1x128xf32>
      %c0_194 = arith.constant 0 : index
      %c2_195 = arith.constant 2 : index
      %c0_196 = arith.constant 0 : index
      %c0_197 = arith.constant 0 : index
      %385 = vector.load %arg2[%c0_194, %c2_195, %c0_196, %c0_197] : memref<2x4x1x128xf32, #tpu.memory_space<vmem>>, vector<1x1x1x128xf32>
      %386 = vector.shape_cast %385 : vector<1x1x1x128xf32> to vector<1x128xf32>
      %387 = math.exp %386 : vector<1x128xf32>
      %388 = arith.mulf %384, %387 : vector<1x128xf32>
      %389 = arith.addf %351, %388 : vector<1x128xf32>
      %cst_198 = arith.constant 0.000000e+00 : f32
      %390 = vector.broadcast %cst_198 : f32 to vector<1x128xf32>
      %c0_199 = arith.constant 0 : index
      %c3_200 = arith.constant 3 : index
      %391 = memref.load %arg4[%c0_199, %c3_200] : memref<4x4xf32, #tpu.memory_space<smem>>
      %c0_i32_201 = arith.constant 0 : i32
      %392 = vector.broadcast %c0_i32_201 : i32 to vector<1x128xi32>
      %393 = arith.cmpi eq, %275, %392 : vector<1x128xi32>
      %394 = arith.extui %393 : vector<1x128xi1> to vector<1x128xi32>
      %395 = arith.sitofp %394 : vector<1x128xi32> to vector<1x128xf32>
      %396 = vector.broadcast %391 : f32 to vector<1x128xf32>
      %397 = arith.mulf %396, %395 : vector<1x128xf32>
      %398 = arith.addf %390, %397 : vector<1x128xf32>
      %c1_202 = arith.constant 1 : index
      %c3_203 = arith.constant 3 : index
      %399 = memref.load %arg4[%c1_202, %c3_203] : memref<4x4xf32, #tpu.memory_space<smem>>
      %c1_i32_204 = arith.constant 1 : i32
      %400 = vector.broadcast %c1_i32_204 : i32 to vector<1x128xi32>
      %401 = arith.cmpi eq, %275, %400 : vector<1x128xi32>
      %402 = arith.extui %401 : vector<1x128xi1> to vector<1x128xi32>
      %403 = arith.sitofp %402 : vector<1x128xi32> to vector<1x128xf32>
      %404 = vector.broadcast %399 : f32 to vector<1x128xf32>
      %405 = arith.mulf %404, %403 : vector<1x128xf32>
      %406 = arith.addf %398, %405 : vector<1x128xf32>
      %c2_205 = arith.constant 2 : index
      %c3_206 = arith.constant 3 : index
      %407 = memref.load %arg4[%c2_205, %c3_206] : memref<4x4xf32, #tpu.memory_space<smem>>
      %c2_i32_207 = arith.constant 2 : i32
      %408 = vector.broadcast %c2_i32_207 : i32 to vector<1x128xi32>
      %409 = arith.cmpi eq, %275, %408 : vector<1x128xi32>
      %410 = arith.extui %409 : vector<1x128xi1> to vector<1x128xi32>
      %411 = arith.sitofp %410 : vector<1x128xi32> to vector<1x128xf32>
      %412 = vector.broadcast %407 : f32 to vector<1x128xf32>
      %413 = arith.mulf %412, %411 : vector<1x128xf32>
      %414 = arith.addf %406, %413 : vector<1x128xf32>
      %c3_208 = arith.constant 3 : index
      %c3_209 = arith.constant 3 : index
      %415 = memref.load %arg4[%c3_208, %c3_209] : memref<4x4xf32, #tpu.memory_space<smem>>
      %c3_i32_210 = arith.constant 3 : i32
      %416 = vector.broadcast %c3_i32_210 : i32 to vector<1x128xi32>
      %417 = arith.cmpi eq, %275, %416 : vector<1x128xi32>
      %418 = arith.extui %417 : vector<1x128xi1> to vector<1x128xi32>
      %419 = arith.sitofp %418 : vector<1x128xi32> to vector<1x128xf32>
      %420 = vector.broadcast %415 : f32 to vector<1x128xf32>
      %421 = arith.mulf %420, %419 : vector<1x128xf32>
      %422 = arith.addf %414, %421 : vector<1x128xf32>
      %c0_211 = arith.constant 0 : index
      %c3_212 = arith.constant 3 : index
      %c0_213 = arith.constant 0 : index
      %c0_214 = arith.constant 0 : index
      %423 = vector.load %arg2[%c0_211, %c3_212, %c0_213, %c0_214] : memref<2x4x1x128xf32, #tpu.memory_space<vmem>>, vector<1x1x1x128xf32>
      %424 = vector.shape_cast %423 : vector<1x1x1x128xf32> to vector<1x128xf32>
      %425 = math.exp %424 : vector<1x128xf32>
      %426 = arith.mulf %422, %425 : vector<1x128xf32>
      %427 = arith.addf %389, %426 : vector<1x128xf32>
      %c1_215 = arith.constant 1 : index
      %c0_216 = arith.constant 0 : index
      %c0_217 = arith.constant 0 : index
      %428 = vector.load %arg3[%c1_215, %c0_216, %c0_217] : memref<2x1x128xi8, #tpu.memory_space<vmem>>, vector<1x1x128xi8>
      %429 = vector.shape_cast %428 : vector<1x1x128xi8> to vector<1x128xi8>
      %430 = arith.extsi %429 : vector<1x128xi8> to vector<1x128xi32>
      %cst_218 = arith.constant 0.000000e+00 : f32
      %431 = vector.broadcast %cst_218 : f32 to vector<1x128xf32>
      %c0_219 = arith.constant 0 : index
      %c0_220 = arith.constant 0 : index
      %432 = memref.load %arg4[%c0_219, %c0_220] : memref<4x4xf32, #tpu.memory_space<smem>>
      %c0_i32_221 = arith.constant 0 : i32
      %433 = vector.broadcast %c0_i32_221 : i32 to vector<1x128xi32>
      %434 = arith.cmpi eq, %430, %433 : vector<1x128xi32>
      %435 = arith.extui %434 : vector<1x128xi1> to vector<1x128xi32>
      %436 = arith.sitofp %435 : vector<1x128xi32> to vector<1x128xf32>
      %437 = vector.broadcast %432 : f32 to vector<1x128xf32>
      %438 = arith.mulf %437, %436 : vector<1x128xf32>
      %439 = arith.addf %431, %438 : vector<1x128xf32>
      %c1_222 = arith.constant 1 : index
      %c0_223 = arith.constant 0 : index
      %440 = memref.load %arg4[%c1_222, %c0_223] : memref<4x4xf32, #tpu.memory_space<smem>>
      %c1_i32_224 = arith.constant 1 : i32
      %441 = vector.broadcast %c1_i32_224 : i32 to vector<1x128xi32>
      %442 = arith.cmpi eq, %430, %441 : vector<1x128xi32>
      %443 = arith.extui %442 : vector<1x128xi1> to vector<1x128xi32>
      %444 = arith.sitofp %443 : vector<1x128xi32> to vector<1x128xf32>
      %445 = vector.broadcast %440 : f32 to vector<1x128xf32>
      %446 = arith.mulf %445, %444 : vector<1x128xf32>
      %447 = arith.addf %439, %446 : vector<1x128xf32>
      %c2_225 = arith.constant 2 : index
      %c0_226 = arith.constant 0 : index
      %448 = memref.load %arg4[%c2_225, %c0_226] : memref<4x4xf32, #tpu.memory_space<smem>>
      %c2_i32_227 = arith.constant 2 : i32
      %449 = vector.broadcast %c2_i32_227 : i32 to vector<1x128xi32>
      %450 = arith.cmpi eq, %430, %449 : vector<1x128xi32>
      %451 = arith.extui %450 : vector<1x128xi1> to vector<1x128xi32>
      %452 = arith.sitofp %451 : vector<1x128xi32> to vector<1x128xf32>
      %453 = vector.broadcast %448 : f32 to vector<1x128xf32>
      %454 = arith.mulf %453, %452 : vector<1x128xf32>
      %455 = arith.addf %447, %454 : vector<1x128xf32>
      %c3_228 = arith.constant 3 : index
      %c0_229 = arith.constant 0 : index
      %456 = memref.load %arg4[%c3_228, %c0_229] : memref<4x4xf32, #tpu.memory_space<smem>>
      %c3_i32_230 = arith.constant 3 : i32
      %457 = vector.broadcast %c3_i32_230 : i32 to vector<1x128xi32>
      %458 = arith.cmpi eq, %430, %457 : vector<1x128xi32>
      %459 = arith.extui %458 : vector<1x128xi1> to vector<1x128xi32>
      %460 = arith.sitofp %459 : vector<1x128xi32> to vector<1x128xf32>
      %461 = vector.broadcast %456 : f32 to vector<1x128xf32>
      %462 = arith.mulf %461, %460 : vector<1x128xf32>
      %463 = arith.addf %455, %462 : vector<1x128xf32>
      %c1_231 = arith.constant 1 : index
      %c0_232 = arith.constant 0 : index
      %c0_233 = arith.constant 0 : index
      %c0_234 = arith.constant 0 : index
      %464 = vector.load %arg2[%c1_231, %c0_232, %c0_233, %c0_234] : memref<2x4x1x128xf32, #tpu.memory_space<vmem>>, vector<1x1x1x128xf32>
      %465 = vector.shape_cast %464 : vector<1x1x1x128xf32> to vector<1x128xf32>
      %466 = math.exp %465 : vector<1x128xf32>
      %467 = arith.mulf %463, %466 : vector<1x128xf32>
      %468 = arith.addf %427, %467 : vector<1x128xf32>
      %cst_235 = arith.constant 0.000000e+00 : f32
      %469 = vector.broadcast %cst_235 : f32 to vector<1x128xf32>
      %c0_236 = arith.constant 0 : index
      %c1_237 = arith.constant 1 : index
      %470 = memref.load %arg4[%c0_236, %c1_237] : memref<4x4xf32, #tpu.memory_space<smem>>
      %c0_i32_238 = arith.constant 0 : i32
      %471 = vector.broadcast %c0_i32_238 : i32 to vector<1x128xi32>
      %472 = arith.cmpi eq, %430, %471 : vector<1x128xi32>
      %473 = arith.extui %472 : vector<1x128xi1> to vector<1x128xi32>
      %474 = arith.sitofp %473 : vector<1x128xi32> to vector<1x128xf32>
      %475 = vector.broadcast %470 : f32 to vector<1x128xf32>
      %476 = arith.mulf %475, %474 : vector<1x128xf32>
      %477 = arith.addf %469, %476 : vector<1x128xf32>
      %c1_239 = arith.constant 1 : index
      %c1_240 = arith.constant 1 : index
      %478 = memref.load %arg4[%c1_239, %c1_240] : memref<4x4xf32, #tpu.memory_space<smem>>
      %c1_i32_241 = arith.constant 1 : i32
      %479 = vector.broadcast %c1_i32_241 : i32 to vector<1x128xi32>
      %480 = arith.cmpi eq, %430, %479 : vector<1x128xi32>
      %481 = arith.extui %480 : vector<1x128xi1> to vector<1x128xi32>
      %482 = arith.sitofp %481 : vector<1x128xi32> to vector<1x128xf32>
      %483 = vector.broadcast %478 : f32 to vector<1x128xf32>
      %484 = arith.mulf %483, %482 : vector<1x128xf32>
      %485 = arith.addf %477, %484 : vector<1x128xf32>
      %c2_242 = arith.constant 2 : index
      %c1_243 = arith.constant 1 : index
      %486 = memref.load %arg4[%c2_242, %c1_243] : memref<4x4xf32, #tpu.memory_space<smem>>
      %c2_i32_244 = arith.constant 2 : i32
      %487 = vector.broadcast %c2_i32_244 : i32 to vector<1x128xi32>
      %488 = arith.cmpi eq, %430, %487 : vector<1x128xi32>
      %489 = arith.extui %488 : vector<1x128xi1> to vector<1x128xi32>
      %490 = arith.sitofp %489 : vector<1x128xi32> to vector<1x128xf32>
      %491 = vector.broadcast %486 : f32 to vector<1x128xf32>
      %492 = arith.mulf %491, %490 : vector<1x128xf32>
      %493 = arith.addf %485, %492 : vector<1x128xf32>
      %c3_245 = arith.constant 3 : index
      %c1_246 = arith.constant 1 : index
      %494 = memref.load %arg4[%c3_245, %c1_246] : memref<4x4xf32, #tpu.memory_space<smem>>
      %c3_i32_247 = arith.constant 3 : i32
      %495 = vector.broadcast %c3_i32_247 : i32 to vector<1x128xi32>
      %496 = arith.cmpi eq, %430, %495 : vector<1x128xi32>
      %497 = arith.extui %496 : vector<1x128xi1> to vector<1x128xi32>
      %498 = arith.sitofp %497 : vector<1x128xi32> to vector<1x128xf32>
      %499 = vector.broadcast %494 : f32 to vector<1x128xf32>
      %500 = arith.mulf %499, %498 : vector<1x128xf32>
      %501 = arith.addf %493, %500 : vector<1x128xf32>
      %c1_248 = arith.constant 1 : index
      %c1_249 = arith.constant 1 : index
      %c0_250 = arith.constant 0 : index
      %c0_251 = arith.constant 0 : index
      %502 = vector.load %arg2[%c1_248, %c1_249, %c0_250, %c0_251] : memref<2x4x1x128xf32, #tpu.memory_space<vmem>>, vector<1x1x1x128xf32>
      %503 = vector.shape_cast %502 : vector<1x1x1x128xf32> to vector<1x128xf32>
      %504 = math.exp %503 : vector<1x128xf32>
      %505 = arith.mulf %501, %504 : vector<1x128xf32>
      %506 = arith.addf %468, %505 : vector<1x128xf32>
      %cst_252 = arith.constant 0.000000e+00 : f32
      %507 = vector.broadcast %cst_252 : f32 to vector<1x128xf32>
      %c0_253 = arith.constant 0 : index
      %c2_254 = arith.constant 2 : index
      %508 = memref.load %arg4[%c0_253, %c2_254] : memref<4x4xf32, #tpu.memory_space<smem>>
      %c0_i32_255 = arith.constant 0 : i32
      %509 = vector.broadcast %c0_i32_255 : i32 to vector<1x128xi32>
      %510 = arith.cmpi eq, %430, %509 : vector<1x128xi32>
      %511 = arith.extui %510 : vector<1x128xi1> to vector<1x128xi32>
      %512 = arith.sitofp %511 : vector<1x128xi32> to vector<1x128xf32>
      %513 = vector.broadcast %508 : f32 to vector<1x128xf32>
      %514 = arith.mulf %513, %512 : vector<1x128xf32>
      %515 = arith.addf %507, %514 : vector<1x128xf32>
      %c1_256 = arith.constant 1 : index
      %c2_257 = arith.constant 2 : index
      %516 = memref.load %arg4[%c1_256, %c2_257] : memref<4x4xf32, #tpu.memory_space<smem>>
      %c1_i32_258 = arith.constant 1 : i32
      %517 = vector.broadcast %c1_i32_258 : i32 to vector<1x128xi32>
      %518 = arith.cmpi eq, %430, %517 : vector<1x128xi32>
      %519 = arith.extui %518 : vector<1x128xi1> to vector<1x128xi32>
      %520 = arith.sitofp %519 : vector<1x128xi32> to vector<1x128xf32>
      %521 = vector.broadcast %516 : f32 to vector<1x128xf32>
      %522 = arith.mulf %521, %520 : vector<1x128xf32>
      %523 = arith.addf %515, %522 : vector<1x128xf32>
      %c2_259 = arith.constant 2 : index
      %c2_260 = arith.constant 2 : index
      %524 = memref.load %arg4[%c2_259, %c2_260] : memref<4x4xf32, #tpu.memory_space<smem>>
      %c2_i32_261 = arith.constant 2 : i32
      %525 = vector.broadcast %c2_i32_261 : i32 to vector<1x128xi32>
      %526 = arith.cmpi eq, %430, %525 : vector<1x128xi32>
      %527 = arith.extui %526 : vector<1x128xi1> to vector<1x128xi32>
      %528 = arith.sitofp %527 : vector<1x128xi32> to vector<1x128xf32>
      %529 = vector.broadcast %524 : f32 to vector<1x128xf32>
      %530 = arith.mulf %529, %528 : vector<1x128xf32>
      %531 = arith.addf %523, %530 : vector<1x128xf32>
      %c3_262 = arith.constant 3 : index
      %c2_263 = arith.constant 2 : index
      %532 = memref.load %arg4[%c3_262, %c2_263] : memref<4x4xf32, #tpu.memory_space<smem>>
      %c3_i32_264 = arith.constant 3 : i32
      %533 = vector.broadcast %c3_i32_264 : i32 to vector<1x128xi32>
      %534 = arith.cmpi eq, %430, %533 : vector<1x128xi32>
      %535 = arith.extui %534 : vector<1x128xi1> to vector<1x128xi32>
      %536 = arith.sitofp %535 : vector<1x128xi32> to vector<1x128xf32>
      %537 = vector.broadcast %532 : f32 to vector<1x128xf32>
      %538 = arith.mulf %537, %536 : vector<1x128xf32>
      %539 = arith.addf %531, %538 : vector<1x128xf32>
      %c1_265 = arith.constant 1 : index
      %c2_266 = arith.constant 2 : index
      %c0_267 = arith.constant 0 : index
      %c0_268 = arith.constant 0 : index
      %540 = vector.load %arg2[%c1_265, %c2_266, %c0_267, %c0_268] : memref<2x4x1x128xf32, #tpu.memory_space<vmem>>, vector<1x1x1x128xf32>
      %541 = vector.shape_cast %540 : vector<1x1x1x128xf32> to vector<1x128xf32>
      %542 = math.exp %541 : vector<1x128xf32>
      %543 = arith.mulf %539, %542 : vector<1x128xf32>
      %544 = arith.addf %506, %543 : vector<1x128xf32>
      %cst_269 = arith.constant 0.000000e+00 : f32
      %545 = vector.broadcast %cst_269 : f32 to vector<1x128xf32>
      %c0_270 = arith.constant 0 : index
      %c3_271 = arith.constant 3 : index
      %546 = memref.load %arg4[%c0_270, %c3_271] : memref<4x4xf32, #tpu.memory_space<smem>>
      %c0_i32_272 = arith.constant 0 : i32
      %547 = vector.broadcast %c0_i32_272 : i32 to vector<1x128xi32>
      %548 = arith.cmpi eq, %430, %547 : vector<1x128xi32>
      %549 = arith.extui %548 : vector<1x128xi1> to vector<1x128xi32>
      %550 = arith.sitofp %549 : vector<1x128xi32> to vector<1x128xf32>
      %551 = vector.broadcast %546 : f32 to vector<1x128xf32>
      %552 = arith.mulf %551, %550 : vector<1x128xf32>
      %553 = arith.addf %545, %552 : vector<1x128xf32>
      %c1_273 = arith.constant 1 : index
      %c3_274 = arith.constant 3 : index
      %554 = memref.load %arg4[%c1_273, %c3_274] : memref<4x4xf32, #tpu.memory_space<smem>>
      %c1_i32_275 = arith.constant 1 : i32
      %555 = vector.broadcast %c1_i32_275 : i32 to vector<1x128xi32>
      %556 = arith.cmpi eq, %430, %555 : vector<1x128xi32>
      %557 = arith.extui %556 : vector<1x128xi1> to vector<1x128xi32>
      %558 = arith.sitofp %557 : vector<1x128xi32> to vector<1x128xf32>
      %559 = vector.broadcast %554 : f32 to vector<1x128xf32>
      %560 = arith.mulf %559, %558 : vector<1x128xf32>
      %561 = arith.addf %553, %560 : vector<1x128xf32>
      %c2_276 = arith.constant 2 : index
      %c3_277 = arith.constant 3 : index
      %562 = memref.load %arg4[%c2_276, %c3_277] : memref<4x4xf32, #tpu.memory_space<smem>>
      %c2_i32_278 = arith.constant 2 : i32
      %563 = vector.broadcast %c2_i32_278 : i32 to vector<1x128xi32>
      %564 = arith.cmpi eq, %430, %563 : vector<1x128xi32>
      %565 = arith.extui %564 : vector<1x128xi1> to vector<1x128xi32>
      %566 = arith.sitofp %565 : vector<1x128xi32> to vector<1x128xf32>
      %567 = vector.broadcast %562 : f32 to vector<1x128xf32>
      %568 = arith.mulf %567, %566 : vector<1x128xf32>
      %569 = arith.addf %561, %568 : vector<1x128xf32>
      %c3_279 = arith.constant 3 : index
      %c3_280 = arith.constant 3 : index
      %570 = memref.load %arg4[%c3_279, %c3_280] : memref<4x4xf32, #tpu.memory_space<smem>>
      %c3_i32_281 = arith.constant 3 : i32
      %571 = vector.broadcast %c3_i32_281 : i32 to vector<1x128xi32>
      %572 = arith.cmpi eq, %430, %571 : vector<1x128xi32>
      %573 = arith.extui %572 : vector<1x128xi1> to vector<1x128xi32>
      %574 = arith.sitofp %573 : vector<1x128xi32> to vector<1x128xf32>
      %575 = vector.broadcast %570 : f32 to vector<1x128xf32>
      %576 = arith.mulf %575, %574 : vector<1x128xf32>
      %577 = arith.addf %569, %576 : vector<1x128xf32>
      %c1_282 = arith.constant 1 : index
      %c3_283 = arith.constant 3 : index
      %c0_284 = arith.constant 0 : index
      %c0_285 = arith.constant 0 : index
      %578 = vector.load %arg2[%c1_282, %c3_283, %c0_284, %c0_285] : memref<2x4x1x128xf32, #tpu.memory_space<vmem>>, vector<1x1x1x128xf32>
      %579 = vector.shape_cast %578 : vector<1x1x1x128xf32> to vector<1x128xf32>
      %580 = math.exp %579 : vector<1x128xf32>
      %581 = arith.mulf %577, %580 : vector<1x128xf32>
      %582 = arith.addf %544, %581 : vector<1x128xf32>
      %c2_286 = arith.constant 2 : index
      %c0_287 = arith.constant 0 : index
      %583 = vector.load %arg5[%c2_286, %c0_287] : memref<8x128xf32, #tpu.memory_space<vmem>>, vector<1x128xf32>
      %584 = arith.mulf %582, %271 : vector<1x128xf32>
      %cst_288 = arith.constant dense<0.000000e+00> : vector<128xf32>
      %585 = vector.multi_reduction <add>, %584, %cst_288 [0] : vector<1x128xf32> to vector<128xf32>
      %586 = vector.shape_cast %585 : vector<128xf32> to vector<1x128xf32>
      %587 = arith.addf %583, %586 : vector<1x128xf32>
      %c2_289 = arith.constant 2 : index
      %c0_290 = arith.constant 0 : index
      %588 = vector.load %arg5[%c2_289, %c0_290] : memref<8x128xf32, #tpu.memory_space<vmem>>, vector<1x128xf32>
      tpu.vector_store %arg5[%c2_289, %c0_290], %587 {strides = array<i32>} : memref<8x128xf32, #tpu.memory_space<vmem>>, vector<1x128xf32>,
    } else {
    }
    %246 = arith.mulf %200, %16 : vector<1x128xf32>
    %cst_130 = arith.constant dense<0.000000e+00> : vector<128xf32>
    %247 = vector.multi_reduction <add>, %246, %cst_130 [0] : vector<1x128xf32> to vector<128xf32>
    %248 = vector.shape_cast %247 : vector<128xf32> to vector<1x128xf32>
    %249 = arith.mulf %203, %16 : vector<1x128xf32>
    %cst_131 = arith.constant dense<0.000000e+00> : vector<128xf32>
    %250 = vector.multi_reduction <add>, %249, %cst_131 [0] : vector<1x128xf32> to vector<128xf32>
    %251 = vector.shape_cast %250 : vector<128xf32> to vector<1x128xf32>
    %c0_132 = arith.constant 0 : index
    %c0_133 = arith.constant 0 : index
    %252 = vector.load %arg5[%c0_132, %c0_133] : memref<8x128xf32, #tpu.memory_space<vmem>>, vector<8x128xf32>
    %cst_134 = arith.constant 0.000000e+00 : f32
    %253 = vector.broadcast %cst_134 : f32 to vector<6x128xf32>
    %254 = tpu.concatenate %248, %251, %253 in 0 : vector<1x128xf32>, vector<1x128xf32>, vector<6x128xf32> -> vector<8x128xf32>
    %255 = arith.addf %252, %254 : vector<8x128xf32>
    %c0_135 = arith.constant 0 : index
    %c0_136 = arith.constant 0 : index
    %256 = vector.load %arg5[%c0_135, %c0_136] : memref<8x128xf32, #tpu.memory_space<vmem>>, vector<8x128xf32>
    tpu.vector_store %arg5[%c0_135, %c0_136], %255 {strides = array<i32>} : memref<8x128xf32, #tpu.memory_space<vmem>>, vector<8x128xf32>,
    %c0_137 = arith.constant 0 : index
    %c0_138 = arith.constant 0 : index
    %257 = vector.load %arg6[%c0_137, %c0_138] : memref<24x128xf32, #tpu.memory_space<vmem>>, vector<24x128xf32>
    %258 = tpu.concatenate %100, %109, %118, %127, %211, %220, %229, %238, %44, %56, %68, %80, %155, %167, %179, %191 in 0 : vector<1x128xf32>, vector<1x128xf32>, vector<1x128xf32>, vector<1x128xf32>, vector<1x128xf32>, vector<1x128xf32>, vector<1x128xf32>, vector<1x128xf32>, vector<1x128xf32>, vector<1x128xf32>, vector<1x128xf32>, vector<1x128xf32>, vector<1x128xf32>, vector<1x128xf32>, vector<1x128xf32>, vector<1x128xf32> -> vector<16x128xf32>
    %259 = tpu.concatenate %102, %111, %120, %129, %213, %222, %231, %240 in 0 : vector<1x128xf32>, vector<1x128xf32>, vector<1x128xf32>, vector<1x128xf32>, vector<1x128xf32>, vector<1x128xf32>, vector<1x128xf32>, vector<1x128xf32> -> vector<8x128xf32>
    %260 = tpu.concatenate %258, %259 in 0 : vector<16x128xf32>, vector<8x128xf32> -> vector<24x128xf32>
    %261 = arith.addf %257, %260 : vector<24x128xf32>
    %c0_139 = arith.constant 0 : index
    %c0_140 = arith.constant 0 : index
    %262 = vector.load %arg6[%c0_139, %c0_140] : memref<24x128xf32, #tpu.memory_space<vmem>>, vector<24x128xf32>
    tpu.vector_store %arg6[%c0_139, %c0_140], %261 {strides = array<i32>} : memref<24x128xf32, #tpu.memory_space<vmem>>, vector<24x128xf32>,
    return
  }
  func.func @transform_0(%arg0: i32, %arg1: i32) -> (i32, i32, i32, i32) {
    %c1_i32 = arith.constant 1 : i32
    %0 = arith.muli %arg0, %c1_i32 : i32
    %1 = arith.addi %0, %arg1 : i32
    %c0_i32 = arith.constant 0 : i32
    %c0_i32_0 = arith.constant 0 : i32
    %c0_i32_1 = arith.constant 0 : i32
    %c0_i32_2 = arith.constant 0 : i32
    return %c0_i32, %c0_i32_0, %1, %c0_i32_1 : i32, i32, i32, i32
  }
  func.func @transform_1(%arg0: i32, %arg1: i32) -> (i32, i32, i32) {
    %c1_i32 = arith.constant 1 : i32
    %0 = arith.muli %arg0, %c1_i32 : i32
    %1 = arith.addi %0, %arg1 : i32
    %c0_i32 = arith.constant 0 : i32
    %c0_i32_0 = arith.constant 0 : i32
    %c0_i32_1 = arith.constant 0 : i32
    return %c0_i32, %1, %c0_i32_0 : i32, i32, i32
  }
  func.func @transform_2(%arg0: i32, %arg1: i32) -> (i32, i32) {
    %c0_i32 = arith.constant 0 : i32
    %c0_i32_0 = arith.constant 0 : i32
    %c0_i32_1 = arith.constant 0 : i32
    return %c0_i32, %c0_i32_0 : i32, i32
  }
  func.func @transform_3(%arg0: i32, %arg1: i32) -> (i32, i32) {
    %c0_i32 = arith.constant 0 : i32
    %c0_i32_0 = arith.constant 0 : i32
    return %arg0, %c0_i32 : i32, i32
  }
  func.func @transform_4(%arg0: i32, %arg1: i32) -> (i32, i32) {
    %c0_i32 = arith.constant 0 : i32
    %c0_i32_0 = arith.constant 0 : i32
    return %arg0, %c0_i32 : i32, i32
  }
}

</mosaic_0001>

<bundles_post_ra>
// kernel: tpu_custom_call.1
= control target key start
LH: loop header
LB: loop body
LE: loop exit
PB: predicated region body
PF: predicated region fallthrough
CT: control target
= control target key end

     0   :  { %10 = vsyncpa [#allocation3], 0  ;;  %s1179_s0 = inlined_call_operand.hbm [shape: f32[2,4,1,128], index: 0, kind: input, shape index: {}]   ;;  %s1180_s1 = inlined_call_operand.vmem [shape: s8[2,1,128], index: 1, kind: input, shape index: {}]   ;;  %s1181_s2 = inlined_call_operand.vmem [shape: f32[4,4], index: 2, kind: input, shape index: {}]   ;;  %s1182_s3 = inlined_call_operand.hbm [shape: f32[8,128], index: 3, kind: output, shape index: {0}]   ;;  %s1183_s4 = inlined_call_operand.hbm [shape: f32[24,128], index: 4, kind: output, shape index: {1}]  }
   0x1   :  { %11 = vsyncpa [#allocation5], 0 }
   0x2   :  { %12 = vsyncpa [#allocation4], 0 }
   0x3   :  { %13 = vsyncpa [#allocation9], 0  ;;  %s783_s15 = smov [#allocation2]   ;;  %s42_s19 = sshll.u32 %s1181_s2, 4  ;;  %s43_s19 = int_to_ptr.vmem [resolvable:$true] %s42_s19 }
   0x4   :  { %s22_s16 = sshll.u32 %s783_s15, 4  ;;  %s23_s16 = int_to_ptr.vmem [resolvable:$true] %s22_s16 }
   0x5   :  { %s711_s20 = scalar_lea.vmem %s23_s16, 128  ;;  %p716_p1 = scmp.lt.s32.totalorder %s23_s16, %s23_s16 }
   0x6   :  { %p712_p0 = scmp.ne.s32.totalorder %s23_s16, %s711_s20  ;;  %p717_p2 = scmp.lt.s32.totalorder %s711_s20, %s711_s20 }
   0x8   :  { %p718_p3 = por %p717_p2, %p716_p1 }
   0xa   :  { %p719_p4 = pnand %p718_p3, %p712_p0 }
   0xc   :  { %722 = shalt.err (!%p719_p4)
}
   0xd   :  { %s784_s21 = smov 16   ;;  %s785_s22 = smov 1  }
   0xe   :  { %28 = dma.hbm_to_vmem [thread:$0]  %s1179_s0, 128, %s23_s16, [#allocation3], %s784_s21, %s784_s21, %s785_s22  }
   0xf   :  { %s723_s25 = scalar_lea.vmem %s43_s19, 64  ;;  %p728_p6 = scmp.lt.s32.totalorder %s43_s19, %s43_s19 }
  0x10   :  { %p724_p5 = scmp.ne.s32.totalorder %s43_s19, %s723_s25  ;;  %p729_p7 = scmp.lt.s32.totalorder %s723_s25, %s723_s25 }
  0x12   :  { %p730_p8 = por %p729_p7, %p728_p6 }
  0x14   :  { %p731_p9 = pnand %p730_p8, %p724_p5 }
  0x16   :  { %734 = shalt.err (!%p731_p9)
}
  0x17   :  { %s786_s2 = smov [#allocation6]  }
  0x18   :  { %45 = dma.vmem_to_smem %s43_s19, 64, %s786_s2, [#allocation5]  }
  0x19   :  { %775 = dma.done.wait [#allocation3], 128  }
  0x1a   :  { %776 = vsyncadd [#allocation3], 4294967168 }
  0x1b   :  { %777 = dma.done.wait [#allocation5], 64  }
  0x1c   :  { %778 = vsyncadd [#allocation5], 4294967232 }
  0x1d   :  { %52 = sfence }
  0x1e   :  { %v241_v0 = vld [vmem:[%s1180_s1] sm:$0x1]  ;;  %s826_s0 = sld [smem:[#allocation6]]  ;;  %v787_v1 = vmov 0.0   ;;  %v292_v5 = vld [vmem:[#allocation2 + $0x1] sm:$0x1]  ;;  %v73_v18 = vlaneseq }
  0x1f   :  { %67 = vst [vmem:[#allocation7] sm:$0xff] %v787_v1  ;;  %v242_v2 = vunpack.c.0.s8 %v241_v0  ;;  %s829_s28 = sld [smem:[#allocation6 + $0x80]]  ;;  %v271_v3 = vld [vmem:[#allocation2] sm:$0x1]  ;;  %v293_v8 = vmul.f32 1.442695, %v292_v5 }
  0x20   :  { %s831_s29 = sld [smem:[#allocation6 + $0x100]]  ;;  %v272_v4 = vmul.f32 1.442695, %v271_v3  ;;  %v313_v11 = vld [vmem:[#allocation2 + $0x2] sm:$0x1]  ;;  %v901_v35 = vshrl.u32 %v73_v18, 7 }
  0x21   :  { %vm244_vm0 = vcmp.eq.s32.totalorder %v242_v2, 0  ;;  %vm251_vm1 = vcmp.eq.s32.totalorder %v242_v2, 1  ;;  %vm258_vm2 = vcmp.eq.s32.totalorder %v242_v2, 2  ;;  %s833_s30 = sld [smem:[#allocation6 + $0x180]]  ;;  %vm265_vm3 = vcmp.eq.s32.totalorder %v242_v2, 3 }
  0x22   :  { %v836_v6 = vsel %vm244_vm0, 1.0, %v787_v1  ;;  %s838_s5 = sld [smem:[#allocation6 + $0x1]]  ;;  %v841_v7 = vsel %vm251_vm1, 1.0, %v787_v1  ;;  %v847_v10 = vsel %vm258_vm2, 1.0, %v787_v1  ;;  %659 = vpow2.f32 %v272_v4  ;;  %v645_v17 = vld [vmem:[%s1180_s1 + $0x1] sm:$0x1] }
  0x23   :  { %s843_s6 = sld [smem:[#allocation6 + $0x81]]  ;;  %661 = vpow2.f32 %v293_v8  ;;  %v314_v16 = vmul.f32 1.442695, %v313_v11  ;;  %v334_v20 = vld [vmem:[#allocation2 + $0x3] sm:$0x1]  ;;  %v872_v22 = vsel %vm265_vm3, 1.0, %v787_v1  ;;  %v884_v27 = vunpack.c.0.s8 %v645_v17 }
  0x24   :  { %v247_v9 = vstv %s826_s0  ;;  %s849_s7 = sld [smem:[#allocation6 + $0x101]]  ;;  %v335_v30 = vmul.f32 1.442695, %v334_v20  ;;  %v361_v38 = vld [vmem:[#allocation2 + $0x4] sm:$0x1]  ;;  %v75_v3 = vmul.u32 128, %v901_v35 }
  0x25   :  { %v248_v12 = vmul.f32 %v836_v6, %v247_v9  ;;  %v254_v13 = vstv %s829_s28  ;;  %s855_s8 = sld [smem:[#allocation6 + $0x181]]  ;;  %663 = vpow2.f32 %v314_v16  ;;  %vm341_vm4 = vcmp.eq.s32.totalorder %v884_v27, 0 }
  0x26   :  { %v255_v14 = vmul.f32 %v841_v7, %v254_v13  ;;  %v261_v15 = vstv %s831_s29  ;;  %s861_s9 = sld [smem:[#allocation6 + $0x2]]  ;;  %vm346_vm5 = vcmp.eq.s32.totalorder %v884_v27, 1  ;;  %665 = vpow2.f32 %v335_v30 }
  0x27   :  { %v262_v19 = vmul.f32 %v847_v10, %v261_v15  ;;  %s869_s12 = sld [smem:[#allocation6 + $0x82]]  ;;  %v268_v23 = vstv %s833_s30  ;;  %v362_v48 = vmul.f32 1.442695, %v361_v38  ;;  %v646_v51 = vsel %vm341_vm4, 1.0, %v787_v1 }
  0x28   :  { %v256_v21 = vadd.f32 %v255_v14, %v248_v12  ;;  %v277_v24 = vstv %s838_s5  ;;  %s876_s13 = sld [smem:[#allocation6 + $0x102]]  ;;  %v269_v32 = vmul.f32 %v872_v22, %v268_v23  ;;  %v647_v52 = vsel %vm346_vm5, 1.0, %v787_v1 }
  0x29   :  { %v278_v25 = vmul.f32 %v836_v6, %v277_v24  ;;  %v281_v26 = vstv %s843_s6  ;;  %s882_s14 = sld [smem:[#allocation6 + $0x182]]  ;;  %vm351_vm6 = vcmp.eq.s32.totalorder %v884_v27, 2  ;;  %v344_v0 = vmul.f32 %v646_v51, %v247_v9 }
  0x2a   :  { %v282_v28 = vmul.f32 %v841_v7, %v281_v26  ;;  %v285_v29 = vstv %s849_s7  ;;  %s890_s15 = sld [smem:[#allocation6 + $0x3]]  ;;  %v263_v31 = vadd.f32 %v262_v19, %v256_v21  ;;  %v349_v2 = vmul.f32 %v647_v52, %v254_v13  ;;  %v387_v19 = vld [vmem:[#allocation2 + $0x6] sm:$0x1] }
  0x2b   :  { %v286_v33 = vmul.f32 %v847_v10, %v285_v29  ;;  %v289_v34 = vstv %s855_s8  ;;  %s899_s16 = sld [smem:[#allocation6 + $0x83]]  ;;  %v79_v4 = vand.u32 127, %v73_v18  ;;  %vm356_vm7 = vcmp.eq.s32.totalorder %v884_v27, 3 }
  0x2c   :  { %v283_v36 = vadd.f32 %v282_v28, %v278_v25  ;;  %v298_v37 = vstv %s861_s9  ;;  %s904_s17 = sld [smem:[#allocation6 + $0x103]]  ;;  %v290_v39 = vmul.f32 %v872_v22, %v289_v34  ;;  %v270_v45 = vadd.f32 %v269_v32, %v263_v31  ;;  %v400_v32 = vld [vmem:[#allocation2 + $0x7] sm:$0x1] }
  0x2d   :  { %v299_v40 = vmul.f32 %v836_v6, %v298_v37  ;;  %v302_v41 = vstv %s869_s12  ;;  %s912_s18 = sld [smem:[#allocation6 + $0x183]]  ;;  %667 = vpow2.f32 %v362_v48  ;;  %v350_v14 = vadd.f32 %v349_v2, %v344_v0 }
  0x2e   :  { %v287_v42 = vadd.f32 %v286_v33, %v283_v36  ;;  %v303_v43 = vmul.f32 %v841_v7, %v302_v41  ;;  %v306_v44 = vstv %s876_s13  ;;  %v366_v17 = vmul.f32 %v646_v51, %v277_v24  ;;  %v957_v24 = vld [vmem:[#allocation2] sm:$0x1] }
  0x2f   :  { %v307_v46 = vmul.f32 %v847_v10, %v306_v44  ;;  %v310_v47 = vstv %s882_s14  ;;  %v660_v53 = vpop.eup %659  ;;  %v368_v18 = vmul.f32 %v647_v52, %v281_v26  ;;  %v955_v20 = vsel %vm356_vm7, 1.0, %v787_v1 }
  0x30   :  { %v304_v49 = vadd.f32 %v303_v43, %v299_v40  ;;  %v319_v50 = vstv %s890_s15  ;;  %v291_v54 = vadd.f32 %v290_v39, %v287_v42  ;;  %v662_v57 = vpop.eup %661  ;;  %v311_v59 = vmul.f32 %v872_v22, %v310_v47  ;;  %v964_v40 = vld [vmem:[#allocation2 + $0x1] sm:$0x1] }
  0x31   :  { %v320_v55 = vmul.f32 %v836_v6, %v319_v50  ;;  %v323_v56 = vstv %s899_s16  ;;  %v648_v6 = vsel %vm351_vm6, 1.0, %v787_v1  ;;  %v80_v25 = vadd.s32 %v79_v4, %v75_v3 }
  0x32   :  { %v308_v58 = vadd.f32 %v307_v46, %v304_v49  ;;  %v324_v60 = vmul.f32 %v841_v7, %v323_v56  ;;  %v327_v61 = vstv %s904_s17  ;;  %v274_v7 = vmul.f32 %v660_v53, %v270_v45  ;;  %v664_v13 = vpop.eup %663  ;;  %v972_v49 = vld [vmem:[#allocation2 + $0x2] sm:$0x1] }
  0x33   :  { %v328_v62 = vmul.f32 %v847_v10, %v327_v61  ;;  %v331_v63 = vstv %s912_s18  ;;  %v295_v8 = vmul.f32 %v662_v57, %v291_v54  ;;  %v374_v10 = vld [vmem:[#allocation2 + $0x5] sm:$0x1]  ;;  %v354_v16 = vmul.f32 %v648_v6, %v261_v15  ;;  %v666_v26 = vpop.eup %665 }
  0x34   :  { %v325_v5 = vadd.f32 %v324_v60, %v320_v55  ;;  %v312_v11 = vadd.f32 %v311_v59, %v308_v58  ;;  %v332_v9 = vmul.f32 %v872_v22, %v331_v63  ;;  %v375_v21 = vmul.f32 1.442695, %v374_v10 }
  0x35   :  { %v296_v27 = vadd.f32 %v295_v8, %v274_v7  ;;  %v379_v28 = vmul.f32 %v646_v51, %v298_v37  ;;  %v381_v30 = vmul.f32 %v647_v52, %v302_v41  ;;  %v388_v15 = vmul.f32 1.442695, %v387_v19  ;;  %v966_v37 = vld [vmem:[#allocation2 + $0x4] sm:$0x1]  ;;  %v968_v41 = vld [vmem:[#allocation2 + $0x5] sm:$0x1] }
  0x36   :  { %v329_v12 = vadd.f32 %v328_v62, %v325_v5  ;;  %v316_v22 = vmul.f32 %v664_v13, %v312_v11  ;;  %669 = vpow2.f32 %v375_v21  ;;  %v355_v33 = vadd.f32 %v354_v16, %v350_v14  ;;  %v1005_v5 = vld [vmem:[#allocation2 + $0x7] sm:$0x1] }
  0x37   :  { %v359_v36 = vmul.f32 %v955_v20, %v268_v23  ;;  %v369_v38 = vadd.f32 %v368_v18, %v366_v17  ;;  %v370_v39 = vmul.f32 %v648_v6, %v285_v29  ;;  %vm81_vm8 = vcmp.lt.s32.totalorder %v80_v25, 64 }
  0x38   :  { %v333_v31 = vadd.f32 %v332_v9, %v329_v12  ;;  %v383_v42 = vmul.f32 %v648_v6, %v306_v44  ;;  %671 = vpow2.f32 %v388_v15  ;;  %v382_v43 = vadd.f32 %v381_v30, %v379_v28 }
  0x39   :  { %v392_v45 = vmul.f32 %v646_v51, %v319_v50  ;;  %v394_v46 = vmul.f32 %v647_v52, %v323_v56  ;;  %v401_v48 = vmul.f32 1.442695, %v400_v32  ;;  %v317_v23 = vadd.f32 %v316_v22, %v296_v27  ;;  %v981_v50 = vld [vmem:[#allocation2 + $0x3] sm:$0x1]  ;;  %v983_v51 = vld [vmem:[#allocation2 + $0x6] sm:$0x1] }
  0x3a   :  { %v337_v29 = vmul.f32 %v666_v26, %v333_v31  ;;  %v89_v53 = vmax.f32 %v957_v24, %v964_v40  ;;  %v164_v54 = vmax.f32 %v966_v37, %v968_v41  ;;  %v360_v55 = vadd.f32 %v359_v36, %v355_v33  ;;  %v84_v56 = vld [vmem:[%s1180_s1] sm:$0x1]  ;;  %v668_v0 = vpop.eup %667 }
  0x3b   :  { %v371_v57 = vadd.f32 %v370_v39, %v369_v38  ;;  %v372_v44 = vmul.f32 %v955_v20, %v289_v34  ;;  %673 = vpow2.f32 %v401_v48  ;;  %vm238_vm9 = vcmp.lt.s32.totalorder %v80_v25, 2 }
  0x3c   :  { %v986_v52 = vsub.s32 0, %v901_v35  ;;  %v92_v58 = vmax.f32 %v89_v53, %v972_v49  ;;  %v384_v59 = vadd.f32 %v383_v42, %v382_v43  ;;  %v385_v60 = vmul.f32 %v955_v20, %v310_v47 }
  0x3d   :  { %v395_v34 = vadd.f32 %v394_v46, %v392_v45  ;;  %v396_v62 = vmul.f32 %v648_v6, %v327_v61  ;;  %v999_v2 = vsel %vm81_vm8, 1.0, %v787_v1  ;;  %v338_v35 = vadd.f32 %v337_v29, %v317_v23 }
  0x3e   :  { %v1002_v3 = vmax.f32 %v92_v58, %v981_v50  ;;  %v167_v4 = vmax.f32 %v164_v54, %v983_v51  ;;  %v1008_v7 = vsel %vm238_vm9, 1.0, %v787_v1  ;;  %v364_v47 = vmul.f32 %v668_v0, %v360_v55  ;;  %v624_v1 = vld [vmem:[%s1180_s1 + $0x1] sm:$0x1]  ;;  %v405_v55 = vld [vmem:[#allocation7 + $0x2] sm:$0x1]  ;;  %s788_s1 = smov [#allocation7]  }
  0x3f   :  { %v373_v8 = vadd.f32 %v372_v44, %v371_v57  ;;  %v1010_v61 = vunpack.c.0.s8 %v84_v56  ;;  %v386_v9 = vadd.f32 %v385_v60, %v384_v59  ;;  %v397_v13 = vadd.f32 %v396_v62, %v395_v34  ;;  %s594_s23 = sshll.u32 %s788_s1, 4  ;;  %s595_s23 = int_to_ptr.vmem [resolvable:$true] %s594_s23 }
  0x40   :  { %v97_v6 = vsub.f32 %v957_v24, %v1002_v3  ;;  %v104_v10 = vsub.f32 %v964_v40, %v1002_v3  ;;  %v112_v11 = vsub.f32 %v972_v49, %v1002_v3  ;;  %v120_v12 = vsub.f32 %v981_v50, %v1002_v3  ;;  %s735_s24 = scalar_lea.vmem %s595_s23, 128  ;;  %p740_p11 = scmp.lt.s32.totalorder %s595_s23, %s595_s23 }
  0x41   :  { %v398_v14 = vmul.f32 %v955_v20, %v331_v63  ;;  %v1027_v16 = vmax.f32 %v167_v4, %v1005_v5  ;;  %v365_v17 = vadd.f32 %v364_v47, %v338_v35  ;;  %vm421_vm10 = vcmask 1040384   ;;  %p736_p10 = scmp.ne.s32.totalorder %s595_s23, %s735_s24  ;;  %p741_p12 = scmp.lt.s32.totalorder %s735_s24, %s735_s24 }
  0x42   :  { %v98_v18 = vmul.f32 1.442695, %v97_v6  ;;  %v105_v19 = vmul.f32 1.442695, %v104_v10  ;;  %v113_v21 = vmul.f32 1.442695, %v112_v11  ;;  %v1030_v28 = vunpack.c.0.s8 %v624_v1 }
  0x43   :  { %v670_v25 = vpop.eup %669  ;;  %vm103_vm11 = vcmp.eq.s32.totalorder %v1010_v61, 1  ;;  %v121_v27 = vmul.f32 1.442695, %v120_v12  ;;  %v172_v30 = vsub.f32 %v966_v37, %v1027_v16  ;;  %v179_v20 = vsub.f32 %v968_v41, %v1027_v16  ;;  %p742_p13 = por %p741_p12, %p740_p11 }
  0x44   :  { %v377_v22 = vmul.f32 %v670_v25, %v373_v8  ;;  %675 = vpow2.f32 %v98_v18  ;;  %v109_v63 = vsel %vm103_vm11, %v999_v2, 0.0  ;;  %v399_v15 = vadd.f32 %v398_v14, %v397_v13 }
  0x45   :  { %v672_v31 = vpop.eup %671  ;;  %677 = vpow2.f32 %v105_v19  ;;  %v173_v32 = vmul.f32 1.442695, %v172_v30  ;;  %v187_v26 = vsub.f32 %v983_v51, %v1027_v16  ;;  %v180_v38 = vmul.f32 1.442695, %v179_v20  ;;  %p743_p0 = pnand %p742_p13, %p736_p10 }
  0x46   :  { %v378_v33 = vadd.f32 %v377_v22, %v365_v17  ;;  %v390_v36 = vmul.f32 %v672_v31, %v386_v9  ;;  %679 = vpow2.f32 %v113_v21  ;;  %vm96_vm12 = vcmp.eq.s32.totalorder %v1010_v61, 0 }
  0x47   :  { %681 = vpow2.f32 %v121_v27  ;;  %v188_v39 = vmul.f32 1.442695, %v187_v26  ;;  %vm423_vm13 = vcmask 1041408   ;;  %v476_v42 = vrot.slane %v109_v63, %v986_v52 }
  0x48   :  { %v674_v43 = vpop.eup %673  ;;  %v391_v45 = vadd.f32 %v390_v36, %v378_v33  ;;  %v101_v46 = vsel %vm96_vm12, %v999_v2, 0.0  ;;  %683 = vpow2.f32 %v173_v32  ;;  %v195_v48 = vsub.f32 %v1005_v5, %v1027_v16 }
  0x49   :  { %v403_v23 = vmul.f32 %v674_v43, %v399_v15  ;;  %vm111_vm14 = vcmp.eq.s32.totalorder %v1010_v61, 2  ;;  %vm119_vm15 = vcmp.eq.s32.totalorder %v1010_v61, 3  ;;  %685 = vpow2.f32 %v180_v38 }
  0x4a   :  { %vm171_vm0 = vcmp.eq.s32.totalorder %v1030_v28, 0  ;;  %vm178_vm1 = vcmp.eq.s32.totalorder %v1030_v28, 1  ;;  %687 = vpow2.f32 %v188_v39  ;;  %v196_v29 = vmul.f32 1.442695, %v195_v48 }
  0x4b   :  { %v404_v53 = vadd.f32 %v403_v23, %v391_v45  ;;  %vm186_vm2 = vcmp.eq.s32.totalorder %v1030_v28, 2  ;;  %vm194_vm3 = vcmp.eq.s32.totalorder %v1030_v28, 3  ;;  %v526_v54 = vsel %vm421_vm10, %v101_v46, %v476_v42 }
  0x4c   :  { %689 = vpow2.f32 %v196_v29  ;;  %vm516_vm4 = vcmask 1042432   ;;  %v117_v57 = vsel %vm111_vm14, %v999_v2, 0.0  ;;  %v125_v44 = vsel %vm119_vm15, %v999_v2, 0.0 }
  0x4d   :  { %v406_v56 = vmul.f32 %v1008_v7, %v404_v53  ;;  %v176_v58 = vsel %vm171_vm0, %v999_v2, 0.0  ;;  %v184_v59 = vsel %vm178_vm1, %v999_v2, 0.0  ;;  %v192_v60 = vsel %vm186_vm2, %v999_v2, 0.0 }
  0x4e   :  { %v200_v34 = vsel %vm194_vm3, %v999_v2, 0.0  ;;  %v482_v62 = vrot.slane %v117_v57, %v986_v52  ;;  %v488_v0 = vrot.slane %v125_v44, %v986_v52  ;;  %v494_v35 = vrot.slane %v176_v58, %v986_v52 }
  0x4f   :  { %v408_v4 = vadd.f32 %v406_v56, %v405_v55  ;;  %v136_v7 = vmul.f32 1.442695, %v1002_v3  ;;  %vm518_vm5 = vcmask 1043456   ;;  %v500_v47 = vrot.slane %v184_v59, %v986_v52 }
  0x50   :  { %v211_v8 = vmul.f32 1.442695, %v1027_v16  ;;  %vm520_vm6 = vcmask 1044480   ;;  %v506_v6 = vrot.slane %v192_v60, %v986_v52  ;;  %v527_v10 = vsel %vm423_vm13, %v526_v54, %v482_v62 }
  0x51   :  { %v676_v11 = vpop.eup %675  ;;  %409 = vst [vmem:[#allocation7 + $0x2] sm:$0x1] %v408_v4  ;;  %vm522_vm7 = vcmask 1045504   ;;  %v512_v12 = vrot.slane %v200_v34, %v986_v52  ;;  %v528_v1 = vsel %vm516_vm4, %v527_v10, %v488_v0  ;;  %vm524_vm8 = vcmask 1046528  }
  0x52   :  { %v678_v9 = vpop.eup %677  ;;  %v529_v13 = vsel %vm518_vm5, %v528_v1, %v494_v35  ;;  %691 = vpow2.f32 %v136_v7  ;;  %v100_v38 = vsel %vm96_vm12, %v957_v24, 0.0  ;;  %v175_v39 = vsel %vm171_vm0, %v966_v37, 0.0 }
  0x53   :  { %v680_v14 = vpop.eup %679  ;;  %v107_v17 = vadd.f32 %v678_v9, %v676_v11  ;;  %v530_v18 = vsel %vm520_vm6, %v529_v13, %v500_v47  ;;  %693 = vpow2.f32 %v211_v8  ;;  %v108_v42 = vsel %vm103_vm11, %v964_v40, %v100_v38 }
  0x54   :  { %v682_v19 = vpop.eup %681  ;;  %v531_v21 = vsel %vm522_vm7, %v530_v18, %v506_v6  ;;  %v183_v48 = vsel %vm178_vm1, %v968_v41, %v175_v39  ;;  %v116_v24 = vsel %vm111_vm14, %v972_v49, %v108_v42 }
  0x55   :  { %v1087_v25 = vpop.eup %683  ;;  %v115_v27 = vadd.f32 %v680_v14, %v107_v17  ;;  %v532_v30 = vsel %vm524_vm8, %v531_v21, %v512_v12  ;;  %v191_v40 = vsel %vm186_vm2, %v983_v51, %v183_v48  ;;  %v124_v57 = vsel %vm119_vm15, %v981_v50, %v116_v24 }
  0x56   :  { %v686_v22 = vpop.eup %685  ;;  %586 = vst [vmem:[#allocation8 + $0x8] sm:$0xff] %v532_v30  ;;  %v199_v49 = vsel %vm194_vm3, %v1005_v5, %v191_v40 }
  0x57   :  { %v688_v63 = vpop.eup %687  ;;  %v123_v20 = vadd.f32 %v682_v19, %v115_v27  ;;  %v182_v31 = vadd.f32 %v686_v22, %v1087_v25 }
  0x59   :  { %v1091_v15 = vpop.eup %689  ;;  %695 = vrcp.f32 %v123_v20  ;;  %v190_v32 = vadd.f32 %v688_v63, %v182_v31 }
  0x5a   :  { %697 = vlog2.f32 %v123_v20 }
  0x5b   :  { %v198_v26 = vadd.f32 %v1091_v15, %v190_v32  ;;  %v414_v32 = vld [vmem:[#allocation7] sm:$0xff] }
  0x5d   :  { %699 = vlog2.f32 %v198_v26 }
  0x5e   :  { %701 = vrcp.f32 %v198_v26 }
  0x5f   :  { %v692_v33 = vpop.eup %691 }
  0x60   :  { %v694_v36 = vpop.eup %693  ;;  %v138_v43 = vmul.f32 %v692_v33, %v123_v20 }
  0x61   :  { %v213_v45 = vmul.f32 %v694_v36, %v198_v26 }
  0x63   :  { %v214_v54 = vadd.f32 %v213_v45, %v138_v43 }
  0x65   :  { %v412_v59 = vmul.f32 %v999_v2, %v214_v54 }
  0x66   :  { %v696_v46 = vpop.eup %695 }
  0x67   :  { %v698_v23 = vpop.eup %697  ;;  %v128_v29 = vmul.f32 %v696_v46, %v123_v20  ;;  %v419_v7 = vrot.slane %v412_v59, %v986_v52 }
  0x68   :  { %v132_v53 = vmul.f32 0.6931472, %v698_v23 }
  0x69   :  { %v129_v37 = vsub.f32 2.0, %v128_v29 }
  0x6a   :  { %v700_v55 = vpop.eup %699  ;;  %v133_v41 = vadd.f32 %v132_v53, %v1002_v3 }
  0x6b   :  { %v702_v44 = vpop.eup %701  ;;  %v130_v56 = vmul.f32 %v696_v46, %v129_v37  ;;  %v207_v58 = vmul.f32 0.6931472, %v700_v55 }
  0x6c   :  { %v203_v60 = vmul.f32 %v702_v44, %v198_v26  ;;  %v134_v34 = vsub.f32 %v133_v41, %v124_v57 }
  0x6d   :  { %v140_v51 = vmul.f32 %v999_v2, %v130_v56  ;;  %v208_v62 = vadd.f32 %v207_v58, %v1027_v16 }
  0x6e   :  { %v204_v0 = vsub.f32 2.0, %v203_v60 }
  0x6f   :  { %v141_v35 = vmul.f32 %v676_v11, %v140_v51  ;;  %v145_v50 = vmul.f32 %v678_v9, %v140_v51  ;;  %v209_v4 = vsub.f32 %v208_v62, %v199_v49  ;;  %v149_v3 = vmul.f32 %v680_v14, %v140_v51 }
  0x70   :  { %v153_v47 = vmul.f32 %v682_v19, %v140_v51  ;;  %v205_v8 = vmul.f32 %v702_v44, %v204_v0 }
  0x71   :  { %v142_v5 = vsel %vm96_vm12, %v141_v35, 0.0  ;;  %v146_v6 = vsel %vm103_vm11, %v145_v50, 0.0  ;;  %v210_v10 = vadd.f32 %v209_v4, %v134_v34  ;;  %v537_v12 = vrot.slane %v145_v50, %v986_v52 }
  0x72   :  { %v434_v16 = vrot.slane %v146_v6, %v986_v52  ;;  %v150_v11 = vsel %vm111_vm14, %v149_v3, 0.0  ;;  %v154_v1 = vsel %vm119_vm15, %v153_v47, 0.0  ;;  %v215_v9 = vmul.f32 %v999_v2, %v205_v8 }
  0x73   :  { %v410_v13 = vmul.f32 %v999_v2, %v210_v10  ;;  %v575_v14 = vsel %vm421_vm10, %v141_v35, %v537_v12  ;;  %v440_v17 = vrot.slane %v150_v11, %v986_v52  ;;  %v446_v18 = vrot.slane %v154_v1, %v986_v52 }
  0x74   :  { %v514_v19 = vsel %vm421_vm10, %v142_v5, %v434_v16  ;;  %v216_v21 = vmul.f32 %v1087_v25, %v215_v9  ;;  %v220_v27 = vmul.f32 %v686_v22, %v215_v9  ;;  %v224_v30 = vmul.f32 %v688_v63, %v215_v9 }
  0x75   :  { %v422_v61 = vsel %vm421_vm10, %v410_v13, %v419_v7  ;;  %v228_v20 = vmul.f32 %v1091_v15, %v215_v9  ;;  %v515_v2 = vsel %vm423_vm13, %v514_v19, %v440_v17  ;;  %v543_v31 = vrot.slane %v149_v3, %v986_v52 }
  0x76   :  { %v424_v26 = vsel %vm423_vm13, %v422_v61, 0.0  ;;  %v217_v33 = vsel %vm171_vm0, %v216_v21, 0.0  ;;  %v221_v25 = vsel %vm178_vm1, %v220_v27, 0.0  ;;  %v225_v22 = vsel %vm186_vm2, %v224_v30, 0.0 }
  0x77   :  { %v425_v63 = vadd.f32 %v424_v26, %v414_v32  ;;  %v229_v15 = vsel %vm194_vm3, %v228_v20, 0.0  ;;  %v452_v36 = vrot.slane %v217_v33, %v986_v52  ;;  %v458_v38 = vrot.slane %v221_v25, %v986_v52 }
  0x78   :  { %v464_v39 = vrot.slane %v225_v22, %v986_v52  ;;  %v470_v42 = vrot.slane %v229_v15, %v986_v52  ;;  %v517_v43 = vsel %vm516_vm4, %v515_v2, %v446_v18  ;;  %v549_v45 = vrot.slane %v153_v47, %v986_v52 }
  0x79   :  { %426 = vst [vmem:[#allocation7] sm:$0xff] %v425_v63  ;;  %v519_v46 = vsel %vm518_vm5, %v517_v43, %v452_v36  ;;  %v555_v48 = vrot.slane %v216_v21, %v986_v52  ;;  %v561_v28 = vrot.slane %v220_v27, %v986_v52  ;;  %v567_v24 = vrot.slane %v224_v30, %v986_v52 }
  0x7a   :  { %v521_v23 = vsel %vm520_vm6, %v519_v46, %v458_v38  ;;  %v576_v29 = vsel %vm423_vm13, %v575_v14, %v543_v31 }
  0x7b   :  { %746 = shalt.err (!%p743_p0)
}
  0x7c   :  { %597 = dma.vmem_to_hbm [thread:$0]  %s595_s23, 128, %s1182_s3, [#allocation4]   ;;  %v523_v53 = vsel %vm522_vm7, %v521_v23, %v464_v39  ;;  %v573_v54 = vrot.slane %v228_v20, %v986_v52  ;;  %v577_v37 = vsel %vm516_vm4, %v576_v29, %v549_v45 }
  0x7d   :  { %v525_v40 = vsel %vm524_vm8, %v523_v53, %v470_v42  ;;  %v578_v55 = vsel %vm518_vm5, %v577_v37, %v555_v48  ;;  %s789_s26 = smov [#allocation8]  }
  0x7e   :  { %s603_s27 = sshll.u32 %s789_s26, 4  ;;  %v579_v57 = vsel %vm520_vm6, %v578_v55, %v561_v28  ;;  %585 = vst [vmem:[#allocation8] sm:$0xff] %v525_v40  ;;  %s604_s27 = int_to_ptr.vmem [resolvable:$true] %s603_s27 }
  0x7f   :  { %v580_v41 = vsel %vm522_vm7, %v579_v57, %v567_v24  ;;  %s755_s3 = scalar_lea.vmem %s604_s27, 384  ;;  %p760_p2 = scmp.lt.s32.totalorder %s604_s27, %s604_s27 }
  0x80   :  { %v581_v44 = vsel %vm524_vm8, %v580_v41, %v573_v54  ;;  %p756_p1 = scmp.ne.s32.totalorder %s604_s27, %s755_s3  ;;  %p761_p3 = scmp.lt.s32.totalorder %s755_s3, %s755_s3 }
  0x81   :  { %587 = vst [vmem:[#allocation8 + $0x10] sm:$0xff] %v581_v44 }
  0x82   :  { %p762_p4 = por %p761_p3, %p760_p2 }
  0x84   :  { %p763_p5 = pnand %p762_p4, %p756_p1 }
  0x86   :  { %766 = shalt.err (!%p763_p5)
}
  0x87   :  { %s790_s0 = smov 128   ;;  %s791_s28 = smov 8  }
  0x88   :  { %609 = dma.vmem_to_hbm [thread:$0]  %s604_s27, 384, %s1183_s4, [#allocation9], %s790_s0, %s790_s0, %s791_s28  }
  0x89   :  { %779 = dma.done.wait [#allocation4], 128  }
  0x8a   :  { %780 = vsyncadd [#allocation4], 4294967168 }
  0x8b   :  { %781 = dma.done.wait [#allocation9], 384  }
  0x8c   :  { %782 = vsyncadd [#allocation9], 4294966912 }
  0x8d   :  { %616 = vsyncpa [#allocation3], 1 }
  0x8e   :  { %617 = vsyncpa [#allocation4], 1 }
  0x8f   :  { %618 = vsyncpa [#allocation9], 1 }
  0x90   :  { %619 = vsyncpa [#allocation5], 1 }

</bundles_post_ra>
